<compile_context>
chip_gen: v5e
topology: v5e:2x2
jax: 0.10.0
libtpu: 0.0.40
codegen_flags: <defaults>
</compile_context>

<pallas_src>
import functools
import math

import jax
import jax.numpy as jnp
from jax import lax
from jax.experimental import pallas as pl
from jax.experimental.pallas import tpu as pltpu


# Below v7x's 64 MiB physical VMEM, above every chip's default scoped limit.
_VMEM_LIMIT = 48 * 1024 * 1024


def _pick_tile(dim, target, quantum):
    """Largest tile <= target that is a multiple of `quantum` and divides dim."""
    if dim <= target:
        return dim
    t = (target // quantum) * quantum
    while t >= quantum:
        if dim % t == 0:
            return t
        t -= quantum
    return dim  # fall back to the whole (untiled) dimension


# ------------------------------ tiled matmuls --------------------------------

def _matmul_kernel(x_ref, wt_ref, o_ref, acc_ref):
    @pl.when(pl.program_id(2) == 0)
    def _():
        acc_ref[...] = jnp.zeros_like(acc_ref)

    acc_ref[...] += jnp.dot(x_ref[...], wt_ref[...],
                            preferred_element_type=jnp.float32)

    @pl.when(pl.program_id(2) == pl.num_programs(2) - 1)
    def _():
        o_ref[...] = acc_ref[...].astype(o_ref.dtype)


def _matmul_bias_kernel(x_ref, wt_ref, b_ref, o_ref, acc_ref):
    @pl.when(pl.program_id(2) == 0)
    def _():
        acc_ref[...] = jnp.zeros_like(acc_ref)

    acc_ref[...] += jnp.dot(x_ref[...], wt_ref[...],
                            preferred_element_type=jnp.float32)

    @pl.when(pl.program_id(2) == pl.num_programs(2) - 1)
    def _():
        o_ref[...] = (acc_ref[...] + b_ref[...]).astype(o_ref.dtype)


def _dual_matmul_bias_kernel(x1_ref, w1_ref, x2_ref, w2_ref, b_ref, o_ref,
                             acc_ref):
    @pl.when(pl.program_id(2) == 0)
    def _():
        acc_ref[...] = jnp.zeros_like(acc_ref)

    acc_ref[...] += jnp.dot(x1_ref[...], w1_ref[...],
                            preferred_element_type=jnp.float32)
    acc_ref[...] += jnp.dot(x2_ref[...], w2_ref[...],
                            preferred_element_type=jnp.float32)

    @pl.when(pl.program_id(2) == pl.num_programs(2) - 1)
    def _():
        o_ref[...] = (acc_ref[...] + b_ref[...]).astype(o_ref.dtype)


def _mm_specs(M, N, K, tm, tn, tk):
    tm = _pick_tile(M, tm, 8)
    tn = _pick_tile(N, tn, 128)
    tk = _pick_tile(K, tk, 128)
    grid = (M // tm, N // tn, K // tk)          # reduction (K) axis last
    x_spec = pl.BlockSpec((tm, tk), lambda i, j, k: (i, k))
    w_spec = pl.BlockSpec((tk, tn), lambda i, j, k: (k, j))
    b_spec = pl.BlockSpec((1, tn), lambda i, j, k: (0, j))
    o_spec = pl.BlockSpec((tm, tn), lambda i, j, k: (i, j))
    scratch = [pltpu.VMEM((tm, tn), jnp.float32)]
    cparams = pltpu.CompilerParams(
        dimension_semantics=("parallel", "parallel", "arbitrary"),
        vmem_limit_bytes=_VMEM_LIMIT)
    return grid, x_spec, w_spec, b_spec, o_spec, scratch, cparams


def pallas_linear(x, wt, b=None, *, tm=256, tn=256, tk=512):
    """y = x @ wt (+ b).   wt is already transposed: (K, N)."""
    M, K = x.shape
    Kw, N = wt.shape
    assert K == Kw
    grid, x_spec, w_spec, b_spec, o_spec, scratch, cparams = _mm_specs(
        M, N, K, tm, tn, tk)
    if b is None:
        return pl.pallas_call(
            _matmul_kernel,
            out_shape=jax.ShapeDtypeStruct((M, N), x.dtype),
            grid=grid, in_specs=[x_spec, w_spec], out_specs=o_spec,
            scratch_shapes=scratch, compiler_params=cparams,
        )(x, wt)
    return pl.pallas_call(
        _matmul_bias_kernel,
        out_shape=jax.ShapeDtypeStruct((M, N), x.dtype),
        grid=grid, in_specs=[x_spec, w_spec, b_spec], out_specs=o_spec,
        scratch_shapes=scratch, compiler_params=cparams,
    )(x, wt, b.reshape(1, N))


def pallas_dual_linear(x1, w1t, x2, w2t, b, *, tm=256, tn=256, tk=512):
    """y = x1 @ w1t + x2 @ w2t + b, fused in a single kernel."""
    M, K = x1.shape
    _, N = w1t.shape
    assert x2.shape == (M, K) and w2t.shape == (K, N)
    grid, x_spec, w_spec, b_spec, o_spec, scratch, cparams = _mm_specs(
        M, N, K, tm, tn, tk)
    return pl.pallas_call(
        _dual_matmul_bias_kernel,
        out_shape=jax.ShapeDtypeStruct((M, N), x1.dtype),
        grid=grid, in_specs=[x_spec, w_spec, x_spec, w_spec, b_spec],
        out_specs=o_spec, scratch_shapes=scratch, compiler_params=cparams,
    )(x1, w1t, x2, w2t, b.reshape(1, N))


# --------------------------- fused attention core ----------------------------

def _softmax_attend(q, k, v, bias):
    s = lax.dot_general(q, k, (((1,), (1,)), ((), ())),
                        preferred_element_type=jnp.float32) + bias
    m = jnp.max(s, axis=-1, keepdims=True)
    p = jnp.exp(s - m)
    denom = jnp.sum(p, axis=-1, keepdims=True)
    attn = p * pl.reciprocal(denom, approx=True)
    return jnp.dot(attn.astype(v.dtype), v, preferred_element_type=jnp.float32)


def _attn_kernel(qin_ref, kin_ref, vin_ref, b2in_ref, bq_ref, bk_ref, bv_ref,
                 pb_ref, gate_ref, o1_ref, o2_ref, *,
                 heads_per_block, head_dim, scaling):
    # qin/kin/vin: (1, T, Hb*hd) branch-1 q/k/v slabs (role biases pre-folded)
    # b2in       : (1, T, Hb*hd) branch-2 shared base projection slab
    # bq/bk/bv   : (1, Hb*hd)    role biases (added per-role for branch 2 only)
    # pb         : (Hb, T, T)    relative position bias (resident across batch)
    # gate       : (1, Hb, T, 1) gate values
    for n in range(heads_per_block):            # tiny static unroll (Hb <= 4)
        sl = slice(n * head_dim, (n + 1) * head_dim)
        bias = gate_ref[0, n] * pb_ref[n]                        # (T,1)*(T,T)

        # ---- branch 1: standard q/k/v projections, biases already folded ----
        o1 = _softmax_attend(qin_ref[0, :, sl] * scaling,
                             kin_ref[0, :, sl], vin_ref[0, :, sl], bias)
        o1_ref[0, :, sl] = o1.astype(o1_ref.dtype)

        # ---- branch 2: q2/k2/v2 share one base projection, differ by bias ---
        base = b2in_ref[0, :, sl]
        o2 = _softmax_attend((base + bq_ref[:, sl]) * scaling,
                             base + bk_ref[:, sl], base + bv_ref[:, sl], bias)
        o2_ref[0, :, sl] = o2.astype(o2_ref.dtype)


def pallas_dual_mha(proj, bq, bk, bv, pb, gate, *, heads_per_block, scaling):
    """Both attention branches in one kernel.

    proj is the fused (B, T, 4E) projection [q | k | v | base2]; the per-branch
    / per-head-block columns are selected purely via BlockSpec index maps.
    Returns (o1, o2), each in merged (B, T, E) layout.
    """
    B, T, W = proj.shape
    H = pb.shape[0]
    E = W // 4
    hd = E // H
    Hb = heads_per_block
    hd_blk = Hb * hd
    n_hblk = H // Hb

    def src_spec(off):   # off in units of hd_blk-wide column blocks
        return pl.BlockSpec((1, T, hd_blk), lambda h, b, o=off: (b, 0, h + o))

    bias_spec = pl.BlockSpec((1, hd_blk), lambda h, b: (0, h))
    out_spec = pl.BlockSpec((1, T, hd_blk), lambda h, b: (b, 0, h))
    kern = functools.partial(_attn_kernel, heads_per_block=Hb, head_dim=hd,
                             scaling=scaling)
    return pl.pallas_call(
        kern,
        out_shape=(jax.ShapeDtypeStruct((B, T, E), proj.dtype),
                   jax.ShapeDtypeStruct((B, T, E), proj.dtype)),
        grid=(n_hblk, B),   # batch innermost -> pb block stays VMEM-resident
        in_specs=[src_spec(0), src_spec(n_hblk), src_spec(2 * n_hblk),
                  src_spec(3 * n_hblk),
                  bias_spec, bias_spec, bias_spec,
                  pl.BlockSpec((Hb, T, T), lambda h, b: (h, 0, 0)),
                  pl.BlockSpec((1, Hb, T, 1), lambda h, b: (b, h, 0, 0))],
        out_specs=[out_spec, out_spec],
        compiler_params=pltpu.CompilerParams(
            dimension_semantics=("parallel", "arbitrary"),
            vmem_limit_bytes=_VMEM_LIMIT),
    )(proj, proj, proj, proj, bq, bk, bv, pb, gate)


def _pick_heads_per_block(num_heads, head_dim):
    """Smallest head group whose width is 128-lane dense (fallback: all heads)."""
    for hb in range(1, num_heads + 1):
        if num_heads % hb == 0 and (hb * head_dim) % 128 == 0:
            return hb
    return num_heads


# -------------------------- relative position bias ---------------------------

def _relative_positions_bucket(relative_positions, num_buckets, max_distance):
    num_buckets = num_buckets // 2
    relative_buckets = (relative_positions > 0).astype(jnp.int32) * num_buckets
    relative_positions = jnp.abs(relative_positions)
    max_exact = num_buckets // 2
    is_small = relative_positions < max_exact
    # clamp to >=1 inside the log purely to avoid -inf; masked out by `where`
    rel_f = jnp.maximum(relative_positions, 1).astype(jnp.float32)
    rel_if_large = jnp.log(rel_f / max_exact)
    rel_if_large = rel_if_large / math.log(max_distance / max_exact)
    rel_if_large = rel_if_large * (num_buckets - max_exact)
    rel_if_large = (max_exact + rel_if_large).astype(jnp.int32)
    rel_if_large = jnp.minimum(rel_if_large, num_buckets - 1)
    relative_buckets = relative_buckets + jnp.where(
        is_small, relative_positions, rel_if_large)
    return relative_buckets


def compute_bias(rel_attn_embed, query_length, key_length, num_buckets,
                 max_distance):
    context_position = jnp.arange(query_length, dtype=jnp.int32)[:, None]
    memory_position = jnp.arange(key_length, dtype=jnp.int32)[None, :]
    relative_position = memory_position - context_position
    rp_bucket = _relative_positions_bucket(relative_position, num_buckets,
                                           max_distance)
    values = rel_attn_embed[rp_bucket]          # (Tq, Tk, H)
    values = jnp.transpose(values, (2, 0, 1))   # (H, Tq, Tk)
    return values


# --------------------------------- forward -----------------------------------

def make_forward(cfg):
    H = cfg["num_heads"]

    def forward(prep, hidden_states):
        B, T, E = hidden_states.shape
        hd = E // H
        scaling = hd ** -0.5
        Hb = _pick_heads_per_block(H, hd)

        # relative position bias (H, T, T) -- small gather, plain JAX
        pb = compute_bias(prep["rel_attn_embed"], T, T,
                          cfg["num_buckets"], cfg["max_distance"])

        # gated relative-position gate (B, H, T, 1) -- tiny, plain JAX
        ghs = hidden_states.reshape(B, T, H, hd).transpose(0, 2, 1, 3)
        rpp = ghs @ prep["gru_w_t"] + prep["gru_b"]               # (B,H,T,8)
        rpp = rpp.reshape(B, H, T, 2, 4).sum(-1)                  # (B,H,T,2)
        gates = jax.nn.sigmoid(rpp)
        gate_a, gate_b = gates[..., 0:1], gates[..., 1:2]
        gate = gate_a * (gate_b * prep["gru_const"] - 1.0) + 2.0  # (B,H,T,1)

        x2d = hidden_states.reshape(B * T, E)

        # fused input projection [q | k | v | base2]: one (E, 4E) matmul
        proj = pallas_linear(x2d, prep["w_in_t"], prep["b_in"]).reshape(
            B, T, 4 * E)

        # both attention branches in one kernel (shared pb / gate blocks)
        o1, o2 = pallas_dual_mha(proj, prep["bq"], prep["bk"], prep["bv"],
                                 pb, gate, heads_per_block=Hb, scaling=scaling)

        # fused output projections + final add in one kernel
        out = pallas_dual_linear(o1.reshape(B * T, E), prep["wout_t"],
                                 o2.reshape(B * T, E), prep["lora_out_t"],
                                 prep["b_out_sum"])
        attn_output = out.reshape(B, T, E)

        # Module contract: return the *ungated* bias broadcast to (B*H, T, T).
        position_bias = jnp.broadcast_to(pb[None], (B, H, T, T)).reshape(
            B * H, T, T)
        # output_attentions=False path -> attn_weights is None.
        return attn_output, None, position_bias

    return forward


# ------------------------------ init / prepare -------------------------------

def init_params(key, embed_dim, num_heads, lora_dim, lora_rank, num_buckets):
    hd = embed_dim // num_heads
    ks = jax.random.split(key, 18)

    def w(k, shape):
        return jax.random.normal(k, shape, jnp.float32) * 0.02

    return {
        "wq": w(ks[0], (embed_dim, embed_dim)), "bq": w(ks[1], (embed_dim,)),
        "wk": w(ks[2], (embed_dim, embed_dim)), "bk": w(ks[3], (embed_dim,)),
        "wv": w(ks[4], (embed_dim, embed_dim)), "bv": w(ks[5], (embed_dim,)),
        "w_out": w(ks[6], (embed_dim, embed_dim)),
        "b_out": w(ks[7], (embed_dim,)),
        "gru_w": w(ks[8], (8, hd)), "gru_b": w(ks[9], (8,)),
        "gru_const": jnp.ones((1, num_heads, 1, 1), jnp.float32),
        "rel_attn_embed": w(ks[10], (num_buckets, num_heads)),
        "lora_in_w": w(ks[11], (lora_dim, embed_dim)),
        "lora_in_b": w(ks[12], (lora_dim,)),
        "lora_in_A": w(ks[13], (lora_rank, embed_dim)),
        "lora_in_B": w(ks[14], (lora_dim, lora_rank)),
        "lora_out_w": w(ks[15], (embed_dim, lora_dim)),
        "lora_out_b": w(ks[16], (embed_dim,)),
    }


def prepare_params(p, lora_rank):
    """One-time weight fusion (torch layout -> (K, N) matmul layout)."""
    E = p["wq"].shape[0]
    # loralib eval-time merge of the low-rank update of lora_intermediate:
    #   W_eff = W + (B @ A) * (alpha / r), alpha = 1.
    lora_in_eff = p["lora_in_w"] + (p["lora_in_B"] @ p["lora_in_A"]) * (
        1.0 / lora_rank)                                        # (lora_dim, E)
    # Branch 2 projects lora_intermediate(x) with lora_output.weight as its
    # q/k/v weight; collapse the chain into one effective (E, E) projection:
    #   base2 = (x @ W_eff^T + b_li) @ W_lo^T = x @ (W_eff^T W_lo^T) + b_li W_lo^T
    w_base2_t = lora_in_eff.T @ p["lora_out_w"].T               # (E, E)
    b_base2 = p["lora_in_b"] @ p["lora_out_w"].T                # (E,)
    return {
        # fused input projection: branch-1 q/k/v (with biases) + branch-2 base
        "w_in_t": jnp.concatenate(
            [p["wq"].T, p["wk"].T, p["wv"].T, w_base2_t], axis=1),   # (E, 4E)
        "b_in": jnp.concatenate([p["bq"], p["bk"], p["bv"], b_base2]),
        # role biases, added per q/k/v role for branch 2 inside the kernel
        "bq": p["bq"].reshape(1, E),
        "bk": p["bk"].reshape(1, E),
        "bv": p["bv"].reshape(1, E),
        # fused output projection (out = o1 Wout^T + o2 Wlo^T + b_out + b_lo)
        "wout_t": p["w_out"].T,
        "lora_out_t": p["lora_out_w"].T,
        "b_out_sum": p["b_out"] + p["lora_out_b"],
        # gate / relative position bias params
        "gru_w_t": p["gru_w"].T, "gru_b": p["gru_b"],
        "gru_const": p["gru_const"],
        "rel_attn_embed": p["rel_attn_embed"],
    }


# ----------------------------------- main ------------------------------------

if __name__ == "__main__":
    # Small but tile-friendly shapes: head_dim=64 -> 2 heads per kernel block
    # (128-lane-dense slabs), batch/head-block grid exercised.
    B, T, E, H = 2, 16, 256, 4
    cfg = {
        "num_heads": H,
        "num_buckets": 320,
        "max_distance": 800,
        "lora_dim": E,      # module's second MHA call requires lora_dim == embed_dim
        "lora_rank": 4,
    }

    key = jax.random.PRNGKey(0)
    k_params, k_x = jax.random.split(key)
    params = init_params(k_params, E, H, cfg["lora_dim"], cfg["lora_rank"],
                         cfg["num_buckets"])
    prep = prepare_params(params, cfg["lora_rank"])
    hidden_states = jax.random.normal(k_x, (B, T, E), jnp.float32)

    fwd = jax.jit(make_forward(cfg))
    attn_output, attn_weights, position_bias = fwd(prep, hidden_states)
    jax.block_until_ready(attn_output)
    jax.block_until_ready(position_bias)

    assert attn_output.shape == (B, T, E)
    assert position_bias.shape == (B * H, T, T)
    assert attn_weights is None
    print("KERNEL_OK")
</pallas_src>

<mosaic_0001>
module attributes {stable_mosaic.version = 11 : i64} {
  func.func @_matmul_bias_kernel(%arg0: i32, %arg1: i32, %arg2: i32, %arg3: memref<32x256xf32, #tpu.memory_space<vmem>>, %arg4: memref<256x256xf32, #tpu.memory_space<vmem>>, %arg5: memref<1x256xf32, #tpu.memory_space<vmem>>, %arg6: memref<32x256xf32, #tpu.memory_space<vmem>>, %arg7: memref<32x256xf32, #tpu.memory_space<vmem>>) attributes {dimension_semantics = [#tpu.dimension_semantics<parallel>, #tpu.dimension_semantics<parallel>, #tpu.dimension_semantics<arbitrary>], iteration_bounds = array<i64: 1, 4, 1>, scalar_prefetch = 0 : i64, scratch_operands = 1 : i64, tpu.core_type = #tpu.core_type<tc>, window_params = [{transform_indices = @transform_0, window_bounds = array<i64: 32, 256>}, {transform_indices = @transform_1, window_bounds = array<i64: 256, 256>}, {transform_indices = @transform_2, window_bounds = array<i64: 1, 256>}, {transform_indices = @transform_3, window_bounds = array<i64: 32, 256>}]} {
    %c0_i32 = arith.constant 0 : i32
    %0 = arith.cmpi eq, %arg2, %c0_i32 : i32
    %1 = arith.extui %0 : i1 to i32
    %c0_i32_0 = arith.constant 0 : i32
    %2 = arith.cmpi ne, %1, %c0_i32_0 : i32
    scf.if %2 {
      %cst_10 = arith.constant 0.000000e+00 : f32
      %12 = vector.broadcast %cst_10 : f32 to vector<32x256xf32>
      %c0_11 = arith.constant 0 : index
      %c0_12 = arith.constant 0 : index
      %13 = vector.load %arg7[%c0_11, %c0_12] : memref<32x256xf32, #tpu.memory_space<vmem>>, vector<32x256xf32>
      tpu.vector_store %arg7[%c0_11, %c0_12], %12 {strides = array<i32>} : memref<32x256xf32, #tpu.memory_space<vmem>>, vector<32x256xf32>,
    } else {
    }
    %c0 = arith.constant 0 : index
    %c0_1 = arith.constant 0 : index
    %3 = vector.load %arg7[%c0, %c0_1] : memref<32x256xf32, #tpu.memory_space<vmem>>, vector<32x256xf32>
    %c0_2 = arith.constant 0 : index
    %c0_3 = arith.constant 0 : index
    %4 = vector.load %arg3[%c0_2, %c0_3] : memref<32x256xf32, #tpu.memory_space<vmem>>, vector<32x256xf32>
    %c0_4 = arith.constant 0 : index
    %c0_5 = arith.constant 0 : index
    %5 = vector.load %arg4[%c0_4, %c0_5] : memref<256x256xf32, #tpu.memory_space<vmem>>, vector<256x256xf32>
    %cst = arith.constant dense<0.000000e+00> : vector<32x256xf32>
    %6 = tpu.matmul %4, %5, %cst {dimension_numbers = #tpu.dot_dimension_numbers<[1], [0], [0], [1], [0, 0, 1, 1], [], []>} : vector<32x256xf32>, vector<256x256xf32>, vector<32x256xf32> -> vector<32x256xf32>
    %7 = arith.addf %3, %6 : vector<32x256xf32>
    %c0_6 = arith.constant 0 : index
    %c0_7 = arith.constant 0 : index
    %8 = vector.load %arg7[%c0_6, %c0_7] : memref<32x256xf32, #tpu.memory_space<vmem>>, vector<32x256xf32>
    tpu.vector_store %arg7[%c0_6, %c0_7], %7 {strides = array<i32>} : memref<32x256xf32, #tpu.memory_space<vmem>>, vector<32x256xf32>,
    %c0_i32_8 = arith.constant 0 : i32
    %9 = arith.cmpi eq, %arg2, %c0_i32_8 : i32
    %10 = arith.extui %9 : i1 to i32
    %c0_i32_9 = arith.constant 0 : i32
    %11 = arith.cmpi ne, %10, %c0_i32_9 : i32
    scf.if %11 {
      %c0_10 = arith.constant 0 : index
      %c0_11 = arith.constant 0 : index
      %12 = vector.load %arg7[%c0_10, %c0_11] : memref<32x256xf32, #tpu.memory_space<vmem>>, vector<32x256xf32>
      %c0_12 = arith.constant 0 : index
      %c0_13 = arith.constant 0 : index
      %13 = vector.load %arg5[%c0_12, %c0_13] : memref<1x256xf32, #tpu.memory_space<vmem>>, vector<1x256xf32>
      %14 = vector.broadcast %13 : vector<1x256xf32> to vector<32x256xf32>
      %15 = arith.addf %12, %14 : vector<32x256xf32>
      %c0_14 = arith.constant 0 : index
      %c0_15 = arith.constant 0 : index
      %16 = vector.load %arg6[%c0_14, %c0_15] : memref<32x256xf32, #tpu.memory_space<vmem>>, vector<32x256xf32>
      tpu.vector_store %arg6[%c0_14, %c0_15], %15 {strides = array<i32>} : memref<32x256xf32, #tpu.memory_space<vmem>>, vector<32x256xf32>,
    } else {
    }
    return
  }
  func.func @transform_0(%arg0: i32, %arg1: i32, %arg2: i32) -> (i32, i32) {
    %c0_i32 = arith.constant 0 : i32
    return %arg0, %arg2 : i32, i32
  }
  func.func @transform_1(%arg0: i32, %arg1: i32, %arg2: i32) -> (i32, i32) {
    %c0_i32 = arith.constant 0 : i32
    return %arg2, %arg1 : i32, i32
  }
  func.func @transform_2(%arg0: i32, %arg1: i32, %arg2: i32) -> (i32, i32) {
    %c0_i32 = arith.constant 0 : i32
    %c0_i32_0 = arith.constant 0 : i32
    return %c0_i32, %arg1 : i32, i32
  }
  func.func @transform_3(%arg0: i32, %arg1: i32, %arg2: i32) -> (i32, i32) {
    %c0_i32 = arith.constant 0 : i32
    return %arg0, %arg1 : i32, i32
  }
}

module attributes {stable_mosaic.version = 11 : i64} {
  func.func @_attn_kernel(%arg0: i32, %arg1: i32, %arg2: memref<1x16x128xf32, #tpu.memory_space<vmem>>, %arg3: memref<1x16x128xf32, #tpu.memory_space<vmem>>, %arg4: memref<1x16x128xf32, #tpu.memory_space<vmem>>, %arg5: memref<1x16x128xf32, #tpu.memory_space<vmem>>, %arg6: memref<1x128xf32, #tpu.memory_space<vmem>>, %arg7: memref<1x128xf32, #tpu.memory_space<vmem>>, %arg8: memref<1x128xf32, #tpu.memory_space<vmem>>, %arg9: memref<2x16x16xf32, #tpu.memory_space<vmem>>, %arg10: memref<1x2x16x1xf32, #tpu.memory_space<vmem>>, %arg11: memref<1x16x128xf32, #tpu.memory_space<vmem>>, %arg12: memref<1x16x128xf32, #tpu.memory_space<vmem>>) attributes {dimension_semantics = [#tpu.dimension_semantics<parallel>, #tpu.dimension_semantics<arbitrary>], iteration_bounds = array<i64: 2, 2>, scalar_prefetch = 0 : i64, scratch_operands = 0 : i64, tpu.core_type = #tpu.core_type<tc>, window_params = [{transform_indices = @transform_0, window_bounds = array<i64: 1, 16, 128>}, {transform_indices = @transform_1, window_bounds = array<i64: 1, 16, 128>}, {transform_indices = @transform_2, window_bounds = array<i64: 1, 16, 128>}, {transform_indices = @transform_3, window_bounds = array<i64: 1, 16, 128>}, {transform_indices = @transform_4, window_bounds = array<i64: 1, 128>}, {transform_indices = @transform_5, window_bounds = array<i64: 1, 128>}, {transform_indices = @transform_6, window_bounds = array<i64: 1, 128>}, {transform_indices = @transform_7, window_bounds = array<i64: 2, 16, 16>}, {transform_indices = @transform_8, window_bounds = array<i64: 1, 2, 16, 1>}, {transform_indices = @transform_9, window_bounds = array<i64: 1, 16, 128>}, {transform_indices = @transform_10, window_bounds = array<i64: 1, 16, 128>}]} {
    %c0 = arith.constant 0 : index
    %c0_0 = arith.constant 0 : index
    %c0_1 = arith.constant 0 : index
    %c0_2 = arith.constant 0 : index
    %0 = vector.load %arg10[%c0, %c0_0, %c0_1, %c0_2] : memref<1x2x16x1xf32, #tpu.memory_space<vmem>>, vector<1x1x16x1xf32>
    %1 = vector.shape_cast %0 : vector<1x1x16x1xf32> to vector<16x1xf32>
    %c0_3 = arith.constant 0 : index
    %c0_4 = arith.constant 0 : index
    %c0_5 = arith.constant 0 : index
    %2 = vector.load %arg9[%c0_3, %c0_4, %c0_5] : memref<2x16x16xf32, #tpu.memory_space<vmem>>, vector<1x16x16xf32>
    %3 = vector.shape_cast %2 : vector<1x16x16xf32> to vector<16x16xf32>
    %4 = vector.broadcast %1 : vector<16x1xf32> to vector<16x16xf32>
    %5 = arith.mulf %4, %3 : vector<16x16xf32>
    %c0_6 = arith.constant 0 : index
    %c0_7 = arith.constant 0 : index
    %c0_8 = arith.constant 0 : index
    %6 = vector.load %arg2[%c0_6, %c0_7, %c0_8] : memref<1x16x128xf32, #tpu.memory_space<vmem>>, vector<1x16x64xf32>
    %7 = vector.shape_cast %6 : vector<1x16x64xf32> to vector<16x64xf32>
    %cst = arith.constant 1.250000e-01 : f32
    %8 = vector.broadcast %cst : f32 to vector<16x64xf32>
    %9 = arith.mulf %7, %8 : vector<16x64xf32>
    %c0_9 = arith.constant 0 : index
    %c0_10 = arith.constant 0 : index
    %c0_11 = arith.constant 0 : index
    %10 = vector.load %arg3[%c0_9, %c0_10, %c0_11] : memref<1x16x128xf32, #tpu.memory_space<vmem>>, vector<1x16x64xf32>
    %11 = vector.shape_cast %10 : vector<1x16x64xf32> to vector<16x64xf32>
    %c0_12 = arith.constant 0 : index
    %c0_13 = arith.constant 0 : index
    %c0_14 = arith.constant 0 : index
    %12 = vector.load %arg4[%c0_12, %c0_13, %c0_14] : memref<1x16x128xf32, #tpu.memory_space<vmem>>, vector<1x16x64xf32>
    %13 = vector.shape_cast %12 : vector<1x16x64xf32> to vector<16x64xf32>
    %cst_15 = arith.constant dense<0.000000e+00> : vector<16x16xf32>
    %14 = tpu.matmul %9, %11, %cst_15 {dimension_numbers = #tpu.dot_dimension_numbers<[1], [1], [0], [0], [0, 0, 1, 0], [], []>} : vector<16x64xf32>, vector<16x64xf32>, vector<16x16xf32> -> vector<16x16xf32>
    %15 = arith.addf %14, %5 : vector<16x16xf32>
    %cst_16 = arith.constant dense<0xFF800000> : vector<16xf32>
    %16 = vector.multi_reduction <maximumf>, %15, %cst_16 [1] : vector<16x16xf32> to vector<16xf32>
    %17 = vector.shape_cast %16 : vector<16xf32> to vector<16x1xf32>
    %18 = vector.broadcast %17 : vector<16x1xf32> to vector<16x16xf32>
    %19 = arith.subf %15, %18 : vector<16x16xf32>
    %20 = math.exp %19 : vector<16x16xf32>
    %cst_17 = arith.constant dense<0.000000e+00> : vector<16xf32>
    %21 = vector.multi_reduction <add>, %20, %cst_17 [1] : vector<16x16xf32> to vector<16xf32>
    %22 = vector.shape_cast %21 : vector<16xf32> to vector<16x1xf32>
    %23 = tpu.reciprocal %22 {approx = true} : vector<16x1xf32> -> vector<16x1xf32>
    %24 = vector.broadcast %23 : vector<16x1xf32> to vector<16x16xf32>
    %25 = arith.mulf %20, %24 : vector<16x16xf32>
    %cst_18 = arith.constant dense<0.000000e+00> : vector<16x64xf32>
    %26 = tpu.matmul %25, %13, %cst_18 {dimension_numbers = #tpu.dot_dimension_numbers<[1], [0], [0], [1], [0, 0, 1, 1], [], []>} : vector<16x16xf32>, vector<16x64xf32>, vector<16x64xf32> -> vector<16x64xf32>
    %c0_19 = arith.constant 0 : index
    %c0_20 = arith.constant 0 : index
    %c0_21 = arith.constant 0 : index
    %27 = vector.load %arg11[%c0_19, %c0_20, %c0_21] : memref<1x16x128xf32, #tpu.memory_space<vmem>>, vector<1x16x64xf32>
    %28 = vector.shape_cast %27 : vector<1x16x64xf32> to vector<16x64xf32>
    %29 = vector.shape_cast %26 : vector<16x64xf32> to vector<1x16x64xf32>
    tpu.vector_store %arg11[%c0_19, %c0_20, %c0_21], %29 {strides = array<i32>} : memref<1x16x128xf32, #tpu.memory_space<vmem>>, vector<1x16x64xf32>,
    %c0_22 = arith.constant 0 : index
    %c0_23 = arith.constant 0 : index
    %c0_24 = arith.constant 0 : index
    %30 = vector.load %arg5[%c0_22, %c0_23, %c0_24] : memref<1x16x128xf32, #tpu.memory_space<vmem>>, vector<1x16x64xf32>
    %31 = vector.shape_cast %30 : vector<1x16x64xf32> to vector<16x64xf32>
    %c0_25 = arith.constant 0 : index
    %c0_26 = arith.constant 0 : index
    %32 = vector.load %arg6[%c0_25, %c0_26] : memref<1x128xf32, #tpu.memory_space<vmem>>, vector<1x64xf32>
    %33 = vector.broadcast %32 : vector<1x64xf32> to vector<16x64xf32>
    %34 = arith.addf %31, %33 : vector<16x64xf32>
    %cst_27 = arith.constant 1.250000e-01 : f32
    %35 = vector.broadcast %cst_27 : f32 to vector<16x64xf32>
    %36 = arith.mulf %34, %35 : vector<16x64xf32>
    %c0_28 = arith.constant 0 : index
    %c0_29 = arith.constant 0 : index
    %37 = vector.load %arg7[%c0_28, %c0_29] : memref<1x128xf32, #tpu.memory_space<vmem>>, vector<1x64xf32>
    %38 = vector.broadcast %37 : vector<1x64xf32> to vector<16x64xf32>
    %39 = arith.addf %31, %38 : vector<16x64xf32>
    %c0_30 = arith.constant 0 : index
    %c0_31 = arith.constant 0 : index
    %40 = vector.load %arg8[%c0_30, %c0_31] : memref<1x128xf32, #tpu.memory_space<vmem>>, vector<1x64xf32>
    %41 = vector.broadcast %40 : vector<1x64xf32> to vector<16x64xf32>
    %42 = arith.addf %31, %41 : vector<16x64xf32>
    %cst_32 = arith.constant dense<0.000000e+00> : vector<16x16xf32>
    %43 = tpu.matmul %36, %39, %cst_32 {dimension_numbers = #tpu.dot_dimension_numbers<[1], [1], [0], [0], [0, 0, 1, 0], [], []>} : vector<16x64xf32>, vector<16x64xf32>, vector<16x16xf32> -> vector<16x16xf32>
    %44 = arith.addf %43, %5 : vector<16x16xf32>
    %cst_33 = arith.constant dense<0xFF800000> : vector<16xf32>
    %45 = vector.multi_reduction <maximumf>, %44, %cst_33 [1] : vector<16x16xf32> to vector<16xf32>
    %46 = vector.shape_cast %45 : vector<16xf32> to vector<16x1xf32>
    %47 = vector.broadcast %46 : vector<16x1xf32> to vector<16x16xf32>
    %48 = arith.subf %44, %47 : vector<16x16xf32>
    %49 = math.exp %48 : vector<16x16xf32>
    %cst_34 = arith.constant dense<0.000000e+00> : vector<16xf32>
    %50 = vector.multi_reduction <add>, %49, %cst_34 [1] : vector<16x16xf32> to vector<16xf32>
    %51 = vector.shape_cast %50 : vector<16xf32> to vector<16x1xf32>
    %52 = tpu.reciprocal %51 {approx = true} : vector<16x1xf32> -> vector<16x1xf32>
    %53 = vector.broadcast %52 : vector<16x1xf32> to vector<16x16xf32>
    %54 = arith.mulf %49, %53 : vector<16x16xf32>
    %cst_35 = arith.constant dense<0.000000e+00> : vector<16x64xf32>
    %55 = tpu.matmul %54, %42, %cst_35 {dimension_numbers = #tpu.dot_dimension_numbers<[1], [0], [0], [1], [0, 0, 1, 1], [], []>} : vector<16x16xf32>, vector<16x64xf32>, vector<16x64xf32> -> vector<16x64xf32>
    %c0_36 = arith.constant 0 : index
    %c0_37 = arith.constant 0 : index
    %c0_38 = arith.constant 0 : index
    %56 = vector.load %arg12[%c0_36, %c0_37, %c0_38] : memref<1x16x128xf32, #tpu.memory_space<vmem>>, vector<1x16x64xf32>
    %57 = vector.shape_cast %56 : vector<1x16x64xf32> to vector<16x64xf32>
    %58 = vector.shape_cast %55 : vector<16x64xf32> to vector<1x16x64xf32>
    tpu.vector_store %arg12[%c0_36, %c0_37, %c0_38], %58 {strides = array<i32>} : memref<1x16x128xf32, #tpu.memory_space<vmem>>, vector<1x16x64xf32>,
    %c0_39 = arith.constant 0 : index
    %c1 = arith.constant 1 : index
    %c0_40 = arith.constant 0 : index
    %c0_41 = arith.constant 0 : index
    %59 = vector.load %arg10[%c0_39, %c1, %c0_40, %c0_41] : memref<1x2x16x1xf32, #tpu.memory_space<vmem>>, vector<1x1x16x1xf32>
    %60 = vector.shape_cast %59 : vector<1x1x16x1xf32> to vector<16x1xf32>
    %c1_42 = arith.constant 1 : index
    %c0_43 = arith.constant 0 : index
    %c0_44 = arith.constant 0 : index
    %61 = vector.load %arg9[%c1_42, %c0_43, %c0_44] : memref<2x16x16xf32, #tpu.memory_space<vmem>>, vector<1x16x16xf32>
    %62 = vector.shape_cast %61 : vector<1x16x16xf32> to vector<16x16xf32>
    %63 = vector.broadcast %60 : vector<16x1xf32> to vector<16x16xf32>
    %64 = arith.mulf %63, %62 : vector<16x16xf32>
    %c0_45 = arith.constant 0 : index
    %c0_46 = arith.constant 0 : index
    %c64 = arith.constant 64 : index
    %65 = vector.load %arg2[%c0_45, %c0_46, %c64] : memref<1x16x128xf32, #tpu.memory_space<vmem>>, vector<1x16x64xf32>
    %66 = vector.shape_cast %65 : vector<1x16x64xf32> to vector<16x64xf32>
    %cst_47 = arith.constant 1.250000e-01 : f32
    %67 = vector.broadcast %cst_47 : f32 to vector<16x64xf32>
    %68 = arith.mulf %66, %67 : vector<16x64xf32>
    %c0_48 = arith.constant 0 : index
    %c0_49 = arith.constant 0 : index
    %c64_50 = arith.constant 64 : index
    %69 = vector.load %arg3[%c0_48, %c0_49, %c64_50] : memref<1x16x128xf32, #tpu.memory_space<vmem>>, vector<1x16x64xf32>
    %70 = vector.shape_cast %69 : vector<1x16x64xf32> to vector<16x64xf32>
    %c0_51 = arith.constant 0 : index
    %c0_52 = arith.constant 0 : index
    %c64_53 = arith.constant 64 : index
    %71 = vector.load %arg4[%c0_51, %c0_52, %c64_53] : memref<1x16x128xf32, #tpu.memory_space<vmem>>, vector<1x16x64xf32>
    %72 = vector.shape_cast %71 : vector<1x16x64xf32> to vector<16x64xf32>
    %cst_54 = arith.constant dense<0.000000e+00> : vector<16x16xf32>
    %73 = tpu.matmul %68, %70, %cst_54 {dimension_numbers = #tpu.dot_dimension_numbers<[1], [1], [0], [0], [0, 0, 1, 0], [], []>} : vector<16x64xf32>, vector<16x64xf32>, vector<16x16xf32> -> vector<16x16xf32>
    %74 = arith.addf %73, %64 : vector<16x16xf32>
    %cst_55 = arith.constant dense<0xFF800000> : vector<16xf32>
    %75 = vector.multi_reduction <maximumf>, %74, %cst_55 [1] : vector<16x16xf32> to vector<16xf32>
    %76 = vector.shape_cast %75 : vector<16xf32> to vector<16x1xf32>
    %77 = vector.broadcast %76 : vector<16x1xf32> to vector<16x16xf32>
    %78 = arith.subf %74, %77 : vector<16x16xf32>
    %79 = math.exp %78 : vector<16x16xf32>
    %cst_56 = arith.constant dense<0.000000e+00> : vector<16xf32>
    %80 = vector.multi_reduction <add>, %79, %cst_56 [1] : vector<16x16xf32> to vector<16xf32>
    %81 = vector.shape_cast %80 : vector<16xf32> to vector<16x1xf32>
    %82 = tpu.reciprocal %81 {approx = true} : vector<16x1xf32> -> vector<16x1xf32>
    %83 = vector.broadcast %82 : vector<16x1xf32> to vector<16x16xf32>
    %84 = arith.mulf %79, %83 : vector<16x16xf32>
    %cst_57 = arith.constant dense<0.000000e+00> : vector<16x64xf32>
    %85 = tpu.matmul %84, %72, %cst_57 {dimension_numbers = #tpu.dot_dimension_numbers<[1], [0], [0], [1], [0, 0, 1, 1], [], []>} : vector<16x16xf32>, vector<16x64xf32>, vector<16x64xf32> -> vector<16x64xf32>
    %c0_58 = arith.constant 0 : index
    %c0_59 = arith.constant 0 : index
    %c64_60 = arith.constant 64 : index
    %86 = vector.load %arg11[%c0_58, %c0_59, %c64_60] : memref<1x16x128xf32, #tpu.memory_space<vmem>>, vector<1x16x64xf32>
    %87 = vector.shape_cast %86 : vector<1x16x64xf32> to vector<16x64xf32>
    %88 = vector.shape_cast %85 : vector<16x64xf32> to vector<1x16x64xf32>
    tpu.vector_store %arg11[%c0_58, %c0_59, %c64_60], %88 {strides = array<i32>} : memref<1x16x128xf32, #tpu.memory_space<vmem>>, vector<1x16x64xf32>,
    %c0_61 = arith.constant 0 : index
    %c0_62 = arith.constant 0 : index
    %c64_63 = arith.constant 64 : index
    %89 = vector.load %arg5[%c0_61, %c0_62, %c64_63] : memref<1x16x128xf32, #tpu.memory_space<vmem>>, vector<1x16x64xf32>
    %90 = vector.shape_cast %89 : vector<1x16x64xf32> to vector<16x64xf32>
    %c0_64 = arith.constant 0 : index
    %c64_65 = arith.constant 64 : index
    %91 = vector.load %arg6[%c0_64, %c64_65] : memref<1x128xf32, #tpu.memory_space<vmem>>, vector<1x64xf32>
    %92 = vector.broadcast %91 : vector<1x64xf32> to vector<16x64xf32>
    %93 = arith.addf %90, %92 : vector<16x64xf32>
    %cst_66 = arith.constant 1.250000e-01 : f32
    %94 = vector.broadcast %cst_66 : f32 to vector<16x64xf32>
    %95 = arith.mulf %93, %94 : vector<16x64xf32>
    %c0_67 = arith.constant 0 : index
    %c64_68 = arith.constant 64 : index
    %96 = vector.load %arg7[%c0_67, %c64_68] : memref<1x128xf32, #tpu.memory_space<vmem>>, vector<1x64xf32>
    %97 = vector.broadcast %96 : vector<1x64xf32> to vector<16x64xf32>
    %98 = arith.addf %90, %97 : vector<16x64xf32>
    %c0_69 = arith.constant 0 : index
    %c64_70 = arith.constant 64 : index
    %99 = vector.load %arg8[%c0_69, %c64_70] : memref<1x128xf32, #tpu.memory_space<vmem>>, vector<1x64xf32>
    %100 = vector.broadcast %99 : vector<1x64xf32> to vector<16x64xf32>
    %101 = arith.addf %90, %100 : vector<16x64xf32>
    %cst_71 = arith.constant dense<0.000000e+00> : vector<16x16xf32>
    %102 = tpu.matmul %95, %98, %cst_71 {dimension_numbers = #tpu.dot_dimension_numbers<[1], [1], [0], [0], [0, 0, 1, 0], [], []>} : vector<16x64xf32>, vector<16x64xf32>, vector<16x16xf32> -> vector<16x16xf32>
    %103 = arith.addf %102, %64 : vector<16x16xf32>
    %cst_72 = arith.constant dense<0xFF800000> : vector<16xf32>
    %104 = vector.multi_reduction <maximumf>, %103, %cst_72 [1] : vector<16x16xf32> to vector<16xf32>
    %105 = vector.shape_cast %104 : vector<16xf32> to vector<16x1xf32>
    %106 = vector.broadcast %105 : vector<16x1xf32> to vector<16x16xf32>
    %107 = arith.subf %103, %106 : vector<16x16xf32>
    %108 = math.exp %107 : vector<16x16xf32>
    %cst_73 = arith.constant dense<0.000000e+00> : vector<16xf32>
    %109 = vector.multi_reduction <add>, %108, %cst_73 [1] : vector<16x16xf32> to vector<16xf32>
    %110 = vector.shape_cast %109 : vector<16xf32> to vector<16x1xf32>
    %111 = tpu.reciprocal %110 {approx = true} : vector<16x1xf32> -> vector<16x1xf32>
    %112 = vector.broadcast %111 : vector<16x1xf32> to vector<16x16xf32>
    %113 = arith.mulf %108, %112 : vector<16x16xf32>
    %cst_74 = arith.constant dense<0.000000e+00> : vector<16x64xf32>
    %114 = tpu.matmul %113, %101, %cst_74 {dimension_numbers = #tpu.dot_dimension_numbers<[1], [0], [0], [1], [0, 0, 1, 1], [], []>} : vector<16x16xf32>, vector<16x64xf32>, vector<16x64xf32> -> vector<16x64xf32>
    %c0_75 = arith.constant 0 : index
    %c0_76 = arith.constant 0 : index
    %c64_77 = arith.constant 64 : index
    %115 = vector.load %arg12[%c0_75, %c0_76, %c64_77] : memref<1x16x128xf32, #tpu.memory_space<vmem>>, vector<1x16x64xf32>
    %116 = vector.shape_cast %115 : vector<1x16x64xf32> to vector<16x64xf32>
    %117 = vector.shape_cast %114 : vector<16x64xf32> to vector<1x16x64xf32>
    tpu.vector_store %arg12[%c0_75, %c0_76, %c64_77], %117 {strides = array<i32>} : memref<1x16x128xf32, #tpu.memory_space<vmem>>, vector<1x16x64xf32>,
    return
  }
  func.func @transform_0(%arg0: i32, %arg1: i32) -> (i32, i32, i32) {
    %c0_i32 = arith.constant 0 : i32
    %0 = arith.addi %arg0, %c0_i32 : i32
    %c0_i32_0 = arith.constant 0 : i32
    %c0_i32_1 = arith.constant 0 : i32
    return %arg1, %c0_i32_0, %0 : i32, i32, i32
  }
  func.func @transform_1(%arg0: i32, %arg1: i32) -> (i32, i32, i32) {
    %c2_i32 = arith.constant 2 : i32
    %0 = arith.addi %arg0, %c2_i32 : i32
    %c0_i32 = arith.constant 0 : i32
    %c0_i32_0 = arith.constant 0 : i32
    return %arg1, %c0_i32, %0 : i32, i32, i32
  }
  func.func @transform_2(%arg0: i32, %arg1: i32) -> (i32, i32, i32) {
    %c4_i32 = arith.constant 4 : i32
    %0 = arith.addi %arg0, %c4_i32 : i32
    %c0_i32 = arith.constant 0 : i32
    %c0_i32_0 = arith.constant 0 : i32
    return %arg1, %c0_i32, %0 : i32, i32, i32
  }
  func.func @transform_3(%arg0: i32, %arg1: i32) -> (i32, i32, i32) {
    %c6_i32 = arith.constant 6 : i32
    %0 = arith.addi %arg0, %c6_i32 : i32
    %c0_i32 = arith.constant 0 : i32
    %c0_i32_0 = arith.constant 0 : i32
    return %arg1, %c0_i32, %0 : i32, i32, i32
  }
  func.func @transform_4(%arg0: i32, %arg1: i32) -> (i32, i32) {
    %c0_i32 = arith.constant 0 : i32
    %c0_i32_0 = arith.constant 0 : i32
    return %c0_i32, %arg0 : i32, i32
  }
  func.func @transform_5(%arg0: i32, %arg1: i32) -> (i32, i32) {
    %c0_i32 = arith.constant 0 : i32
    %c0_i32_0 = arith.constant 0 : i32
    return %c0_i32, %arg0 : i32, i32
  }
  func.func @transform_6(%arg0: i32, %arg1: i32) -> (i32, i32) {
    %c0_i32 = arith.constant 0 : i32
    %c0_i32_0 = arith.constant 0 : i32
    return %c0_i32, %arg0 : i32, i32
  }
  func.func @transform_7(%arg0: i32, %arg1: i32) -> (i32, i32, i32) {
    %c0_i32 = arith.constant 0 : i32
    %c0_i32_0 = arith.constant 0 : i32
    %c0_i32_1 = arith.constant 0 : i32
    return %arg0, %c0_i32, %c0_i32_0 : i32, i32, i32
  }
  func.func @transform_8(%arg0: i32, %arg1: i32) -> (i32, i32, i32, i32) {
    %c0_i32 = arith.constant 0 : i32
    %c0_i32_0 = arith.constant 0 : i32
    %c0_i32_1 = arith.constant 0 : i32
    return %arg1, %arg0, %c0_i32, %c0_i32_0 : i32, i32, i32, i32
  }
  func.func @transform_9(%arg0: i32, %arg1: i32) -> (i32, i32, i32) {
    %c0_i32 = arith.constant 0 : i32
    %c0_i32_0 = arith.constant 0 : i32
    return %arg1, %c0_i32, %arg0 : i32, i32, i32
  }
  func.func @transform_10(%arg0: i32, %arg1: i32) -> (i32, i32, i32) {
    %c0_i32 = arith.constant 0 : i32
    %c0_i32_0 = arith.constant 0 : i32
    return %arg1, %c0_i32, %arg0 : i32, i32, i32
  }
}

module attributes {stable_mosaic.version = 11 : i64} {
  func.func @_dual_matmul_bias_kernel(%arg0: i32, %arg1: i32, %arg2: i32, %arg3: memref<32x256xf32, #tpu.memory_space<vmem>>, %arg4: memref<256x256xf32, #tpu.memory_space<vmem>>, %arg5: memref<32x256xf32, #tpu.memory_space<vmem>>, %arg6: memref<256x256xf32, #tpu.memory_space<vmem>>, %arg7: memref<1x256xf32, #tpu.memory_space<vmem>>, %arg8: memref<32x256xf32, #tpu.memory_space<vmem>>, %arg9: memref<32x256xf32, #tpu.memory_space<vmem>>) attributes {dimension_semantics = [#tpu.dimension_semantics<parallel>, #tpu.dimension_semantics<parallel>, #tpu.dimension_semantics<arbitrary>], iteration_bounds = array<i64: 1, 1, 1>, scalar_prefetch = 0 : i64, scratch_operands = 1 : i64, tpu.core_type = #tpu.core_type<tc>, window_params = [{transform_indices = @transform_0, window_bounds = array<i64: 32, 256>}, {transform_indices = @transform_1, window_bounds = array<i64: 256, 256>}, {transform_indices = @transform_2, window_bounds = array<i64: 32, 256>}, {transform_indices = @transform_3, window_bounds = array<i64: 256, 256>}, {transform_indices = @transform_4, window_bounds = array<i64: 1, 256>}, {transform_indices = @transform_5, window_bounds = array<i64: 32, 256>}]} {
    %c0_i32 = arith.constant 0 : i32
    %0 = arith.cmpi eq, %arg2, %c0_i32 : i32
    %1 = arith.extui %0 : i1 to i32
    %c0_i32_0 = arith.constant 0 : i32
    %2 = arith.cmpi ne, %1, %c0_i32_0 : i32
    scf.if %2 {
      %cst_19 = arith.constant 0.000000e+00 : f32
      %18 = vector.broadcast %cst_19 : f32 to vector<32x256xf32>
      %c0_20 = arith.constant 0 : index
      %c0_21 = arith.constant 0 : index
      %19 = vector.load %arg9[%c0_20, %c0_21] : memref<32x256xf32, #tpu.memory_space<vmem>>, vector<32x256xf32>
      tpu.vector_store %arg9[%c0_20, %c0_21], %18 {strides = array<i32>} : memref<32x256xf32, #tpu.memory_space<vmem>>, vector<32x256xf32>,
    } else {
    }
    %c0 = arith.constant 0 : index
    %c0_1 = arith.constant 0 : index
    %3 = vector.load %arg9[%c0, %c0_1] : memref<32x256xf32, #tpu.memory_space<vmem>>, vector<32x256xf32>
    %c0_2 = arith.constant 0 : index
    %c0_3 = arith.constant 0 : index
    %4 = vector.load %arg3[%c0_2, %c0_3] : memref<32x256xf32, #tpu.memory_space<vmem>>, vector<32x256xf32>
    %c0_4 = arith.constant 0 : index
    %c0_5 = arith.constant 0 : index
    %5 = vector.load %arg4[%c0_4, %c0_5] : memref<256x256xf32, #tpu.memory_space<vmem>>, vector<256x256xf32>
    %cst = arith.constant dense<0.000000e+00> : vector<32x256xf32>
    %6 = tpu.matmul %4, %5, %cst {dimension_numbers = #tpu.dot_dimension_numbers<[1], [0], [0], [1], [0, 0, 1, 1], [], []>} : vector<32x256xf32>, vector<256x256xf32>, vector<32x256xf32> -> vector<32x256xf32>
    %7 = arith.addf %3, %6 : vector<32x256xf32>
    %c0_6 = arith.constant 0 : index
    %c0_7 = arith.constant 0 : index
    %8 = vector.load %arg9[%c0_6, %c0_7] : memref<32x256xf32, #tpu.memory_space<vmem>>, vector<32x256xf32>
    tpu.vector_store %arg9[%c0_6, %c0_7], %7 {strides = array<i32>} : memref<32x256xf32, #tpu.memory_space<vmem>>, vector<32x256xf32>,
    %c0_8 = arith.constant 0 : index
    %c0_9 = arith.constant 0 : index
    %9 = vector.load %arg9[%c0_8, %c0_9] : memref<32x256xf32, #tpu.memory_space<vmem>>, vector<32x256xf32>
    %c0_10 = arith.constant 0 : index
    %c0_11 = arith.constant 0 : index
    %10 = vector.load %arg5[%c0_10, %c0_11] : memref<32x256xf32, #tpu.memory_space<vmem>>, vector<32x256xf32>
    %c0_12 = arith.constant 0 : index
    %c0_13 = arith.constant 0 : index
    %11 = vector.load %arg6[%c0_12, %c0_13] : memref<256x256xf32, #tpu.memory_space<vmem>>, vector<256x256xf32>
    %cst_14 = arith.constant dense<0.000000e+00> : vector<32x256xf32>
    %12 = tpu.matmul %10, %11, %cst_14 {dimension_numbers = #tpu.dot_dimension_numbers<[1], [0], [0], [1], [0, 0, 1, 1], [], []>} : vector<32x256xf32>, vector<256x256xf32>, vector<32x256xf32> -> vector<32x256xf32>
    %13 = arith.addf %9, %12 : vector<32x256xf32>
    %c0_15 = arith.constant 0 : index
    %c0_16 = arith.constant 0 : index
    %14 = vector.load %arg9[%c0_15, %c0_16] : memref<32x256xf32, #tpu.memory_space<vmem>>, vector<32x256xf32>
    tpu.vector_store %arg9[%c0_15, %c0_16], %13 {strides = array<i32>} : memref<32x256xf32, #tpu.memory_space<vmem>>, vector<32x256xf32>,
    %c0_i32_17 = arith.constant 0 : i32
    %15 = arith.cmpi eq, %arg2, %c0_i32_17 : i32
    %16 = arith.extui %15 : i1 to i32
    %c0_i32_18 = arith.constant 0 : i32
    %17 = arith.cmpi ne, %16, %c0_i32_18 : i32
    scf.if %17 {
      %c0_19 = arith.constant 0 : index
      %c0_20 = arith.constant 0 : index
      %18 = vector.load %arg9[%c0_19, %c0_20] : memref<32x256xf32, #tpu.memory_space<vmem>>, vector<32x256xf32>
      %c0_21 = arith.constant 0 : index
      %c0_22 = arith.constant 0 : index
      %19 = vector.load %arg7[%c0_21, %c0_22] : memref<1x256xf32, #tpu.memory_space<vmem>>, vector<1x256xf32>
      %20 = vector.broadcast %19 : vector<1x256xf32> to vector<32x256xf32>
      %21 = arith.addf %18, %20 : vector<32x256xf32>
      %c0_23 = arith.constant 0 : index
      %c0_24 = arith.constant 0 : index
      %22 = vector.load %arg8[%c0_23, %c0_24] : memref<32x256xf32, #tpu.memory_space<vmem>>, vector<32x256xf32>
      tpu.vector_store %arg8[%c0_23, %c0_24], %21 {strides = array<i32>} : memref<32x256xf32, #tpu.memory_space<vmem>>, vector<32x256xf32>,
    } else {
    }
    return
  }
  func.func @transform_0(%arg0: i32, %arg1: i32, %arg2: i32) -> (i32, i32) {
    %c0_i32 = arith.constant 0 : i32
    return %arg0, %arg2 : i32, i32
  }
  func.func @transform_1(%arg0: i32, %arg1: i32, %arg2: i32) -> (i32, i32) {
    %c0_i32 = arith.constant 0 : i32
    return %arg2, %arg1 : i32, i32
  }
  func.func @transform_2(%arg0: i32, %arg1: i32, %arg2: i32) -> (i32, i32) {
    %c0_i32 = arith.constant 0 : i32
    return %arg0, %arg2 : i32, i32
  }
  func.func @transform_3(%arg0: i32, %arg1: i32, %arg2: i32) -> (i32, i32) {
    %c0_i32 = arith.constant 0 : i32
    return %arg2, %arg1 : i32, i32
  }
  func.func @transform_4(%arg0: i32, %arg1: i32, %arg2: i32) -> (i32, i32) {
    %c0_i32 = arith.constant 0 : i32
    %c0_i32_0 = arith.constant 0 : i32
    return %c0_i32, %arg1 : i32, i32
  }
  func.func @transform_5(%arg0: i32, %arg1: i32, %arg2: i32) -> (i32, i32) {
    %c0_i32 = arith.constant 0 : i32
    return %arg0, %arg1 : i32, i32
  }
}

</mosaic_0001>

<bundles_post_ra>
// kernel: forward.3
= control target key start
LH: loop header
LB: loop body
LE: loop exit
PB: predicated region body
PF: predicated region fallthrough
CT: control target
= control target key end

     0   :  { %s925_s12 = smov 0   ;;  %s927_s13 = smov 0   ;;  %s1245_s0 = inlined_call_operand.vmem [shape: f32[32,256], index: 0, kind: input, shape index: {}]   ;;  %s1246_s1 = inlined_call_operand.vmem [shape: f32[256,1024], index: 1, kind: input, shape index: {}]   ;;  %s1247_s2 = inlined_call_operand.vmem [shape: f32[1,1024], index: 2, kind: input, shape index: {}]   ;;  %s1248_s3 = inlined_call_operand.vmem [shape: f32[32,1024], index: 3, kind: output, shape index: {}]  }
   0x1   :  { %s929_s14 = smov 0   ;;  %s931_s15 = smov 0  }
   0x2   :  { %s933_s16 = smov 0  }
   0x3 LB: > { %s28_s17 = sadd.s32 1, %s899_s15  ;;  %s806_s18 = sadd.s32 4294967295, %s903_s16   ;;  %s903_s16 = sphi %s933_s16, %s13_s16   ;;  %s899_s15 = sphi %s931_s15, %s1253_s15   ;;  %s895_s14 = sphi %s929_s14, %s1252_s14   ;;  %s891_s13 = sphi %s927_s13, %s1251_s13   ;;  %s887_s12 = sphi %s925_s12, %s1250_s12  }
   0x4   : > { %p30_p0 = scmp.ge.s32.totalorder %s28_s17, 4  ;;  %p76_p1 = scmp.ne.s32.totalorder %s891_s13, %s887_s12 }
   0x5   : > { %p77_p2 = scmp.eq.s32.totalorder %s903_s16, 0  ;;  %p134_p4 = scmp.eq.s32.totalorder %s806_s18, 3 }
   0x6   : > { %s1255_s17 = smov (%p30_p0, %s28_s17), 0  ;;  %s69_s20 = sadd.s32 1, %s891_s13 }
   0x7   : > { %p78_p3 = por %p77_p2, %p76_p1  ;;  %s65_s19 = ssub.s32 %s899_s15, %s1255_s17 }
   0x8   : > { %p67_p5 = scmp.eq.s32.totalorder %s65_s19, 0  ;;  %p960_p6 = por %p134_p4, %p76_p1 }
   0x9   : > { %p810_p7 = scmp.ge.s32.totalorder %s903_s16, 4 }
   0xa   : > { %s965_s22 = scalar_select %p67_p5, %s891_s13, %s69_s20  }
   0xb   : > { %171 = sbr.rel (%p810_p7) target bundleno = 84 (0x54), region = 20 }
  0x10   : > { %174 = sbr.rel (!%p78_p3) target bundleno = 84 (0x54), region = 24  ;;  %s176_s23 = sand.u32 (%p78_p3), 1, %s891_s13  }
  0x11   : > { %s823_s24 = sshll.u32 (%p78_p3), %s899_s15, 4  ;;  %s811_s25 = sshll.u32 (%p78_p3), %s176_s23, 9 }
  0x12   : > { %s973_s28 = scalar_lea.vmem (%p78_p3), %s1246_s1, %s823_s24  ;;  %s978_s29 = scalar_lea.vmem (%p78_p3), [#allocation3], %s811_s25 }
  0x13   : > { %v197_v0 = vld [vmem:[%s973_s28] sm:$0xff] (%p78_p3)  ;;  %v199_v1 = vld [vmem:[%s973_s28 + $0x8] sm:$0xff] (%p78_p3) }
  0x14   : > { %v201_v2 = vld [vmem:[%s973_s28 + $0x40] sm:$0xff] (%p78_p3)  ;;  %198 = vst [vmem:[%s978_s29] sm:$0xff] (%p78_p3), %v197_v0  ;;  %v203_v3 = vld [vmem:[%s973_s28 + $0x48] sm:$0xff] (%p78_p3) }
  0x15   : > { %200 = vst [vmem:[%s978_s29 + $0x8] sm:$0xff] %v199_v1  ;;  %v205_v4 = vld [vmem:[%s973_s28 + $0x80] sm:$0xff]  ;;  %v207_v5 = vld [vmem:[%s973_s28 + $0x88] sm:$0xff] }
  0x16   : > { %202 = vst [vmem:[%s978_s29 + $0x10] sm:$0xff] %v201_v2  ;;  %v209_v6 = vld [vmem:[%s973_s28 + $0xc0] sm:$0xff]  ;;  %v211_v7 = vld [vmem:[%s973_s28 + $0xc8] sm:$0xff] }
  0x17   : > { %204 = vst [vmem:[%s978_s29 + $0x18] sm:$0xff] %v203_v3  ;;  %v213_v8 = vld [vmem:[%s973_s28 + $0x100] sm:$0xff]  ;;  %v215_v9 = vld [vmem:[%s973_s28 + $0x108] sm:$0xff] }
  0x18   : > { %206 = vst [vmem:[%s978_s29 + $0x20] sm:$0xff] %v205_v4  ;;  %v217_v10 = vld [vmem:[%s973_s28 + $0x140] sm:$0xff]  ;;  %v219_v11 = vld [vmem:[%s973_s28 + $0x148] sm:$0xff] }
  0x19   : > { %208 = vst [vmem:[%s978_s29 + $0x28] sm:$0xff] %v207_v5  ;;  %v221_v12 = vld [vmem:[%s973_s28 + $0x180] sm:$0xff]  ;;  %v223_v13 = vld [vmem:[%s973_s28 + $0x188] sm:$0xff] }
  0x1a   : > { %210 = vst [vmem:[%s978_s29 + $0x30] sm:$0xff] %v209_v6  ;;  %v225_v14 = vld [vmem:[%s973_s28 + $0x1c0] sm:$0xff]  ;;  %v227_v15 = vld [vmem:[%s973_s28 + $0x1c8] sm:$0xff] }
  0x1b   : > { %212 = vst [vmem:[%s978_s29 + $0x38] sm:$0xff] %v211_v7  ;;  %v229_v16 = vld [vmem:[%s973_s28 + $0x200] sm:$0xff]  ;;  %v231_v17 = vld [vmem:[%s973_s28 + $0x208] sm:$0xff] }
  0x1c   : > { %214 = vst [vmem:[%s978_s29 + $0x40] sm:$0xff] %v213_v8  ;;  %v233_v18 = vld [vmem:[%s973_s28 + $0x240] sm:$0xff]  ;;  %v235_v19 = vld [vmem:[%s973_s28 + $0x248] sm:$0xff] }
  0x1d   : > { %216 = vst [vmem:[%s978_s29 + $0x48] sm:$0xff] %v215_v9  ;;  %v237_v20 = vld [vmem:[%s973_s28 + $0x280] sm:$0xff]  ;;  %v239_v21 = vld [vmem:[%s973_s28 + $0x288] sm:$0xff] }
  0x1e   : > { %218 = vst [vmem:[%s978_s29 + $0x50] sm:$0xff] %v217_v10  ;;  %v241_v22 = vld [vmem:[%s973_s28 + $0x2c0] sm:$0xff]  ;;  %v243_v23 = vld [vmem:[%s973_s28 + $0x2c8] sm:$0xff] }
  0x1f   : > { %220 = vst [vmem:[%s978_s29 + $0x58] sm:$0xff] %v219_v11  ;;  %v245_v24 = vld [vmem:[%s973_s28 + $0x300] sm:$0xff]  ;;  %v247_v25 = vld [vmem:[%s973_s28 + $0x308] sm:$0xff] }
  0x20   : > { %222 = vst [vmem:[%s978_s29 + $0x60] sm:$0xff] %v221_v12  ;;  %v249_v26 = vld [vmem:[%s973_s28 + $0x340] sm:$0xff]  ;;  %v251_v27 = vld [vmem:[%s973_s28 + $0x348] sm:$0xff] }
  0x21   : > { %224 = vst [vmem:[%s978_s29 + $0x68] sm:$0xff] %v223_v13  ;;  %v253_v28 = vld [vmem:[%s973_s28 + $0x380] sm:$0xff]  ;;  %v255_v29 = vld [vmem:[%s973_s28 + $0x388] sm:$0xff] }
  0x22   : > { %226 = vst [vmem:[%s978_s29 + $0x70] sm:$0xff] %v225_v14  ;;  %v257_v30 = vld [vmem:[%s973_s28 + $0x3c0] sm:$0xff]  ;;  %v259_v31 = vld [vmem:[%s973_s28 + $0x3c8] sm:$0xff] }
  0x23   : > { %228 = vst [vmem:[%s978_s29 + $0x78] sm:$0xff] %v227_v15  ;;  %v261_v32 = vld [vmem:[%s973_s28 + $0x400] sm:$0xff]  ;;  %v263_v33 = vld [vmem:[%s973_s28 + $0x408] sm:$0xff] }
  0x24   : > { %230 = vst [vmem:[%s978_s29 + $0x80] sm:$0xff] %v229_v16  ;;  %v265_v34 = vld [vmem:[%s973_s28 + $0x440] sm:$0xff]  ;;  %v267_v35 = vld [vmem:[%s973_s28 + $0x448] sm:$0xff] }
  0x25   : > { %232 = vst [vmem:[%s978_s29 + $0x88] sm:$0xff] %v231_v17  ;;  %v269_v36 = vld [vmem:[%s973_s28 + $0x480] sm:$0xff]  ;;  %v271_v37 = vld [vmem:[%s973_s28 + $0x488] sm:$0xff] }
  0x26   : > { %234 = vst [vmem:[%s978_s29 + $0x90] sm:$0xff] %v233_v18  ;;  %v273_v38 = vld [vmem:[%s973_s28 + $0x4c0] sm:$0xff]  ;;  %v275_v39 = vld [vmem:[%s973_s28 + $0x4c8] sm:$0xff] }
  0x27   : > { %236 = vst [vmem:[%s978_s29 + $0x98] sm:$0xff] %v235_v19  ;;  %v277_v40 = vld [vmem:[%s973_s28 + $0x500] sm:$0xff]  ;;  %v279_v41 = vld [vmem:[%s973_s28 + $0x508] sm:$0xff] }
  0x28   : > { %238 = vst [vmem:[%s978_s29 + $0xa0] sm:$0xff] %v237_v20  ;;  %v281_v42 = vld [vmem:[%s973_s28 + $0x540] sm:$0xff]  ;;  %v283_v43 = vld [vmem:[%s973_s28 + $0x548] sm:$0xff] }
  0x29   : > { %240 = vst [vmem:[%s978_s29 + $0xa8] sm:$0xff] %v239_v21  ;;  %v285_v44 = vld [vmem:[%s973_s28 + $0x580] sm:$0xff]  ;;  %v287_v45 = vld [vmem:[%s973_s28 + $0x588] sm:$0xff] }
  0x2a   : > { %242 = vst [vmem:[%s978_s29 + $0xb0] sm:$0xff] %v241_v22  ;;  %v289_v46 = vld [vmem:[%s973_s28 + $0x5c0] sm:$0xff]  ;;  %v291_v47 = vld [vmem:[%s973_s28 + $0x5c8] sm:$0xff] }
  0x2b   : > { %244 = vst [vmem:[%s978_s29 + $0xb8] sm:$0xff] %v243_v23  ;;  %v293_v48 = vld [vmem:[%s973_s28 + $0x600] sm:$0xff]  ;;  %v295_v49 = vld [vmem:[%s973_s28 + $0x608] sm:$0xff] }
  0x2c   : > { %246 = vst [vmem:[%s978_s29 + $0xc0] sm:$0xff] %v245_v24  ;;  %v297_v50 = vld [vmem:[%s973_s28 + $0x640] sm:$0xff]  ;;  %v299_v51 = vld [vmem:[%s973_s28 + $0x648] sm:$0xff] }
  0x2d   : > { %248 = vst [vmem:[%s978_s29 + $0xc8] sm:$0xff] %v247_v25  ;;  %v301_v52 = vld [vmem:[%s973_s28 + $0x680] sm:$0xff]  ;;  %v303_v53 = vld [vmem:[%s973_s28 + $0x688] sm:$0xff] }
  0x2e   : > { %250 = vst [vmem:[%s978_s29 + $0xd0] sm:$0xff] %v249_v26  ;;  %v305_v54 = vld [vmem:[%s973_s28 + $0x6c0] sm:$0xff]  ;;  %v307_v55 = vld [vmem:[%s973_s28 + $0x6c8] sm:$0xff] }
  0x2f   : > { %252 = vst [vmem:[%s978_s29 + $0xd8] sm:$0xff] %v251_v27  ;;  %v309_v56 = vld [vmem:[%s973_s28 + $0x700] sm:$0xff]  ;;  %v311_v57 = vld [vmem:[%s973_s28 + $0x708] sm:$0xff] }
  0x30   : > { %254 = vst [vmem:[%s978_s29 + $0xe0] sm:$0xff] %v253_v28  ;;  %v313_v58 = vld [vmem:[%s973_s28 + $0x740] sm:$0xff]  ;;  %v315_v59 = vld [vmem:[%s973_s28 + $0x748] sm:$0xff] }
  0x31   : > { %256 = vst [vmem:[%s978_s29 + $0xe8] sm:$0xff] %v255_v29  ;;  %v317_v60 = vld [vmem:[%s973_s28 + $0x780] sm:$0xff]  ;;  %v319_v61 = vld [vmem:[%s973_s28 + $0x788] sm:$0xff] }
  0x32   : > { %258 = vst [vmem:[%s978_s29 + $0xf0] sm:$0xff] %v257_v30  ;;  %v321_v62 = vld [vmem:[%s973_s28 + $0x7c0] sm:$0xff]  ;;  %v323_v63 = vld [vmem:[%s973_s28 + $0x7c8] sm:$0xff] }
  0x33   : > { %260 = vst [vmem:[%s978_s29 + $0xf8] sm:$0xff] %v259_v31 }
  0x34   : > { %262 = vst [vmem:[%s978_s29 + $0x100] sm:$0xff] %v261_v32 }
  0x35   : > { %264 = vst [vmem:[%s978_s29 + $0x108] sm:$0xff] %v263_v33 }
  0x36   : > { %266 = vst [vmem:[%s978_s29 + $0x110] sm:$0xff] %v265_v34 }
  0x37   : > { %268 = vst [vmem:[%s978_s29 + $0x118] sm:$0xff] %v267_v35 }
  0x38   : > { %270 = vst [vmem:[%s978_s29 + $0x120] sm:$0xff] %v269_v36 }
  0x39   : > { %272 = vst [vmem:[%s978_s29 + $0x128] sm:$0xff] %v271_v37 }
  0x3a   : > { %274 = vst [vmem:[%s978_s29 + $0x130] sm:$0xff] %v273_v38 }
  0x3b   : > { %276 = vst [vmem:[%s978_s29 + $0x138] sm:$0xff] %v275_v39 }
  0x3c   : > { %278 = vst [vmem:[%s978_s29 + $0x140] sm:$0xff] %v277_v40 }
  0x3d   : > { %280 = vst [vmem:[%s978_s29 + $0x148] sm:$0xff] %v279_v41 }
  0x3e   : > { %282 = vst [vmem:[%s978_s29 + $0x150] sm:$0xff] %v281_v42 }
  0x3f   : > { %284 = vst [vmem:[%s978_s29 + $0x158] sm:$0xff] %v283_v43 }
  0x40   : > { %286 = vst [vmem:[%s978_s29 + $0x160] sm:$0xff] %v285_v44 }
  0x41   : > { %288 = vst [vmem:[%s978_s29 + $0x168] sm:$0xff] %v287_v45 }
  0x42   : > { %290 = vst [vmem:[%s978_s29 + $0x170] sm:$0xff] %v289_v46 }
  0x43   : > { %292 = vst [vmem:[%s978_s29 + $0x178] sm:$0xff] %v291_v47 }
  0x44   : > { %294 = vst [vmem:[%s978_s29 + $0x180] sm:$0xff] %v293_v48 }
  0x45   : > { %296 = vst [vmem:[%s978_s29 + $0x188] sm:$0xff] %v295_v49 }
  0x46   : > { %298 = vst [vmem:[%s978_s29 + $0x190] sm:$0xff] %v297_v50 }
  0x47   : > { %300 = vst [vmem:[%s978_s29 + $0x198] sm:$0xff] %v299_v51 }
  0x48   : > { %302 = vst [vmem:[%s978_s29 + $0x1a0] sm:$0xff] %v301_v52 }
  0x49   : > { %304 = vst [vmem:[%s978_s29 + $0x1a8] sm:$0xff] %v303_v53 }
  0x4a   : > { %306 = vst [vmem:[%s978_s29 + $0x1b0] sm:$0xff] %v305_v54 }
  0x4b   : > { %308 = vst [vmem:[%s978_s29 + $0x1b8] sm:$0xff] %v307_v55 }
  0x4c   : > { %310 = vst [vmem:[%s978_s29 + $0x1c0] sm:$0xff] %v309_v56 }
  0x4d   : > { %312 = vst [vmem:[%s978_s29 + $0x1c8] sm:$0xff] %v311_v57 }
  0x4e   : > { %314 = vst [vmem:[%s978_s29 + $0x1d0] sm:$0xff] %v313_v58 }
  0x4f   : > { %316 = vst [vmem:[%s978_s29 + $0x1d8] sm:$0xff] %v315_v59 }
  0x50   : > { %318 = vst [vmem:[%s978_s29 + $0x1e0] sm:$0xff] %v317_v60 }
  0x51   : > { %320 = vst [vmem:[%s978_s29 + $0x1e8] sm:$0xff] %v319_v61 }
  0x52   : > { %322 = vst [vmem:[%s978_s29 + $0x1f0] sm:$0xff] %v321_v62 }
  0x53   : > { %324 = vst [vmem:[%s978_s29 + $0x1f8] sm:$0xff] %v323_v63 }
  0x54 PF: > { %p814_p8 = scmp.ge.s32.totalorder %s903_s16, 1  ;;  %p337_p9 = scmp.lt.s32.totalorder %s903_s16, 5 }
  0x56   : > { %p338_p10 = pnand %p814_p8, %p337_p9 }
  0x57   : > { %s344_s30 = sand.u32 (!%p338_p10), 1, %s887_s12  }
  0x58   : > { %341 = sbr.rel (%p338_p10) target bundleno = 295 (0x127), region = 51  ;;  %s815_s4 = sshll.u32 (!%p338_p10), %s344_s30, 9 }
  0x59   : > { %s1110_s5 = scalar_lea.vmem (!%p338_p10), [#allocation3], %s815_s4  ;;  %s817_s4 = sshll.u32 (!%p338_p10), %s895_s14, 1 }
  0x5a   : > { %p395_p11 = scmp.lt.s32.totalorder (!%p338_p10), %s817_s4, 7  ;;  %s816_s8 = sshll.u32 (!%p338_p10), %s344_s30, 6 }
  0x5b   : > { %s1206_s9 = scalar_lea.vmem (!%p338_p10), [#allocation4], %s816_s8 }
  0x5d   : > { %v460_v0 = vld [vmem:[%s1110_s5 + $0xf8] sm:$0xff]  ;;  %v458_v2 = vld [vmem:[%s1110_s5 + $0xe8] sm:$0xff]  ;;  %v459_v6 = vld [vmem:[%s1110_s5 + $0xf0] sm:$0xff]  ;;  %s1257_s4 = smov (!%p395_p11, %s817_s4), 7  ;;  %s824_s12 = sshll.u32 (%p960_p6), %s895_s14, 4 }
  0x5e   : > { %v492_v1 = vld [vmem:[%s1110_s5 + $0x1f8] sm:$0xff]  ;;  %551 = vmatpush.msra.mxu2 %v460_v0  ;;  %v490_v3 = vld [vmem:[%s1110_s5 + $0x1e8] sm:$0xff]  ;;  %v491_v7 = vld [vmem:[%s1110_s5 + $0x1f0] sm:$0xff]  ;;  %493 = vmatpush.msra.mxu0 %v459_v6  ;;  %s397_s7 = scalar_lea.vmem %s1247_s2, %s1257_s4  ;;  %s670_s11 = scalar_lea.vmem (%p960_p6), %s1248_s3, %s824_s12 }
  0x5f   : > { %580 = vmatpush.msra.mxu3 %v492_v1  ;;  %v456_v4 = vld [vmem:[%s1110_s5 + $0xd8] sm:$0xff]  ;;  %v457_v8 = vld [vmem:[%s1110_s5 + $0xe0] sm:$0xff]  ;;  %522 = vmatpush.msra.mxu1 %v491_v7  ;;  %v454_v10 = vld [vmem:[%s1110_s5 + $0xc8] sm:$0xff] }
  0x60   : > { %v488_v5 = vld [vmem:[%s1110_s5 + $0x1d8] sm:$0xff]  ;;  %552 = vmatpush.msra.mxu2 %v458_v2  ;;  %v489_v9 = vld [vmem:[%s1110_s5 + $0x1e0] sm:$0xff]  ;;  %v486_v11 = vld [vmem:[%s1110_s5 + $0x1c8] sm:$0xff]  ;;  %494 = vmatpush.msra.mxu0 %v457_v8 }
  0x61   : > { %581 = vmatpush.msra.mxu3 %v490_v3  ;;  %v455_v12 = vld [vmem:[%s1110_s5 + $0xd0] sm:$0xff]  ;;  %523 = vmatpush.msra.mxu1 %v489_v9  ;;  %v452_v14 = vld [vmem:[%s1110_s5 + $0xb8] sm:$0xff]  ;;  %v453_v16 = vld [vmem:[%s1110_s5 + $0xc0] sm:$0xff] }
  0x62   : > { %553 = vmatpush.msra.mxu2 %v456_v4  ;;  %v487_v13 = vld [vmem:[%s1110_s5 + $0x1d0] sm:$0xff]  ;;  %v484_v15 = vld [vmem:[%s1110_s5 + $0x1b8] sm:$0xff]  ;;  %v485_v17 = vld [vmem:[%s1110_s5 + $0x1c0] sm:$0xff]  ;;  %495 = vmatpush.msra.mxu0 %v455_v12 }
  0x63   : > { %582 = vmatpush.msra.mxu3 %v488_v5  ;;  %524 = vmatpush.msra.mxu1 %v487_v13  ;;  %v450_v18 = vld [vmem:[%s1110_s5 + $0xa8] sm:$0xff]  ;;  %v451_v20 = vld [vmem:[%s1110_s5 + $0xb0] sm:$0xff]  ;;  %v448_v22 = vld [vmem:[%s1110_s5 + $0x98] sm:$0xff] }
  0x64   : > { %554 = vmatpush.msra.mxu2 %v454_v10  ;;  %v482_v19 = vld [vmem:[%s1110_s5 + $0x1a8] sm:$0xff]  ;;  %v483_v21 = vld [vmem:[%s1110_s5 + $0x1b0] sm:$0xff]  ;;  %496 = vmatpush.msra.mxu0 %v453_v16  ;;  %v480_v23 = vld [vmem:[%s1110_s5 + $0x198] sm:$0xff] }
  0x65   : > { %583 = vmatpush.msra.mxu3 %v486_v11  ;;  %525 = vmatpush.msra.mxu1 %v485_v17  ;;  %v449_v24 = vld [vmem:[%s1110_s5 + $0xa0] sm:$0xff]  ;;  %v446_v26 = vld [vmem:[%s1110_s5 + $0x88] sm:$0xff]  ;;  %v447_v28 = vld [vmem:[%s1110_s5 + $0x90] sm:$0xff] }
  0x66   : > { %555 = vmatpush.msra.mxu2 %v452_v14  ;;  %v481_v25 = vld [vmem:[%s1110_s5 + $0x1a0] sm:$0xff]  ;;  %497 = vmatpush.msra.mxu0 %v451_v20  ;;  %v478_v27 = vld [vmem:[%s1110_s5 + $0x188] sm:$0xff]  ;;  %v479_v29 = vld [vmem:[%s1110_s5 + $0x190] sm:$0xff] }
  0x67   : > { %584 = vmatpush.msra.mxu3 %v484_v15  ;;  %526 = vmatpush.msra.mxu1 %v483_v21  ;;  %v444_v30 = vld [vmem:[%s1110_s5 + $0x78] sm:$0xff]  ;;  %v445_v32 = vld [vmem:[%s1110_s5 + $0x80] sm:$0xff]  ;;  %v442_v34 = vld [vmem:[%s1110_s5 + $0x68] sm:$0xff] }
  0x68   : > { %556 = vmatpush.msra.mxu2 %v450_v18  ;;  %498 = vmatpush.msra.mxu0 %v449_v24  ;;  %v476_v31 = vld [vmem:[%s1110_s5 + $0x178] sm:$0xff]  ;;  %v477_v33 = vld [vmem:[%s1110_s5 + $0x180] sm:$0xff]  ;;  %v474_v35 = vld [vmem:[%s1110_s5 + $0x168] sm:$0xff] }
  0x69   : > { %585 = vmatpush.msra.mxu3 %v482_v19  ;;  %527 = vmatpush.msra.mxu1 %v481_v25  ;;  %v443_v36 = vld [vmem:[%s1110_s5 + $0x70] sm:$0xff]  ;;  %v440_v38 = vld [vmem:[%s1110_s5 + $0x58] sm:$0xff]  ;;  %v441_v40 = vld [vmem:[%s1110_s5 + $0x60] sm:$0xff] }
  0x6a   : > { %557 = vmatpush.msra.mxu2 %v448_v22  ;;  %499 = vmatpush.msra.mxu0 %v447_v28  ;;  %v475_v37 = vld [vmem:[%s1110_s5 + $0x170] sm:$0xff]  ;;  %v472_v39 = vld [vmem:[%s1110_s5 + $0x158] sm:$0xff]  ;;  %v473_v41 = vld [vmem:[%s1110_s5 + $0x160] sm:$0xff] }
  0x6b   : > { %586 = vmatpush.msra.mxu3 %v480_v23  ;;  %528 = vmatpush.msra.mxu1 %v479_v29  ;;  %v438_v42 = vld [vmem:[%s1110_s5 + $0x48] sm:$0xff]  ;;  %v439_v44 = vld [vmem:[%s1110_s5 + $0x50] sm:$0xff]  ;;  %v436_v46 = vld [vmem:[%s1110_s5 + $0x38] sm:$0xff] }
  0x6c   : > { %558 = vmatpush.msra.mxu2 %v446_v26  ;;  %500 = vmatpush.msra.mxu0 %v445_v32  ;;  %v470_v43 = vld [vmem:[%s1110_s5 + $0x148] sm:$0xff]  ;;  %v471_v45 = vld [vmem:[%s1110_s5 + $0x150] sm:$0xff]  ;;  %v468_v47 = vld [vmem:[%s1110_s5 + $0x138] sm:$0xff] }
  0x6d   : > { %587 = vmatpush.msra.mxu3 %v478_v27  ;;  %529 = vmatpush.msra.mxu1 %v477_v33  ;;  %v437_v48 = vld [vmem:[%s1110_s5 + $0x40] sm:$0xff]  ;;  %v434_v50 = vld [vmem:[%s1110_s5 + $0x28] sm:$0xff]  ;;  %v435_v52 = vld [vmem:[%s1110_s5 + $0x30] sm:$0xff] }
  0x6e   : > { %559 = vmatpush.msra.mxu2 %v444_v30  ;;  %501 = vmatpush.msra.mxu0 %v443_v36  ;;  %v469_v49 = vld [vmem:[%s1110_s5 + $0x140] sm:$0xff]  ;;  %v466_v51 = vld [vmem:[%s1110_s5 + $0x128] sm:$0xff]  ;;  %v467_v53 = vld [vmem:[%s1110_s5 + $0x130] sm:$0xff] }
  0x6f   : > { %588 = vmatpush.msra.mxu3 %v476_v31  ;;  %530 = vmatpush.msra.mxu1 %v475_v37  ;;  %v432_v54 = vld [vmem:[%s1110_s5 + $0x18] sm:$0xff]  ;;  %v433_v56 = vld [vmem:[%s1110_s5 + $0x20] sm:$0xff]  ;;  %v430_v58 = vld [vmem:[%s1110_s5 + $0x8] sm:$0xff] }
  0x70   : > { %560 = vmatpush.msra.mxu2 %v442_v34  ;;  %502 = vmatpush.msra.mxu0 %v441_v40  ;;  %v464_v55 = vld [vmem:[%s1110_s5 + $0x118] sm:$0xff]  ;;  %v465_v57 = vld [vmem:[%s1110_s5 + $0x120] sm:$0xff]  ;;  %v462_v59 = vld [vmem:[%s1110_s5 + $0x108] sm:$0xff] }
  0x71   : > { %589 = vmatpush.msra.mxu3 %v474_v35  ;;  %531 = vmatpush.msra.mxu1 %v473_v41  ;;  %v421_v60 = vld [vmem:[%s1245_s0] sm:$0xff]  ;;  %v422_v61 = vld [vmem:[%s1245_s0 + $0x8] sm:$0xff]  ;;  %v431_v62 = vld [vmem:[%s1110_s5 + $0x10] sm:$0xff] }
  0x72   : > { %561 = vmatpush.msra.mxu2 %v440_v38  ;;  %503 = vmatpush.msra.mxu0 %v439_v44  ;;  %v463_v63 = vld [vmem:[%s1110_s5 + $0x110] sm:$0xff]  ;;  %v429_v0 = vld [vmem:[%s1110_s5] sm:$0xff]  ;;  %v424_v3 = vld [vmem:[%s1245_s0 + $0x18] sm:$0xff] }
  0x73   : > { %590 = vmatpush.msra.mxu3 %v472_v39  ;;  %532 = vmatpush.msra.mxu1 %v471_v45  ;;  %v461_v1 = vld [vmem:[%s1110_s5 + $0x100] sm:$0xff]  ;;  %v423_v2 = vld [vmem:[%s1245_s0 + $0x10] sm:$0xff]  ;;  %v426_v5 = vld [vmem:[%s1245_s0 + $0x28] sm:$0xff] }
  0x74   : > { %562 = vmatpush.msra.mxu2 %v438_v42  ;;  %504 = vmatpush.msra.mxu0 %v437_v48  ;;  %v425_v4 = vld [vmem:[%s1245_s0 + $0x20] sm:$0xff]  ;;  %v427_v6 = vld [vmem:[%s1245_s0 + $0x30] sm:$0xff]  ;;  %v428_v7 = vld [vmem:[%s1245_s0 + $0x38] sm:$0xff] }
  0x75   : > { %591 = vmatpush.msra.mxu3 %v470_v43  ;;  %533 = vmatpush.msra.mxu1 %v469_v49  ;;  %v636_v8 = vld [vmem:[%s397_s7] sm:$0x3] }
  0x76   : > { %563 = vmatpush.msra.mxu2 %v436_v46  ;;  %505 = vmatpush.msra.mxu0 %v435_v52  ;;  %v638_v9 = vperm.slane %v636_v8, 0  ;;  %v639_v13 = vperm.slane %v636_v8, 1 }
  0x77   : > { %592 = vmatpush.msra.mxu3 %v468_v47  ;;  %534 = vmatpush.msra.mxu1 %v467_v53 }
  0x78   : > { %564 = vmatpush.msra.mxu2 %v434_v50  ;;  %506 = vmatpush.msra.mxu0 %v433_v56 }
  0x79   : > { %593 = vmatpush.msra.mxu3 %v466_v51  ;;  %535 = vmatpush.msra.mxu1 %v465_v57 }
  0x7a   : > { %565 = vmatpush.msra.mxu2 %v432_v54  ;;  %507 = vmatpush.msra.mxu0 %v431_v62 }
  0x7b   : > { %594 = vmatpush.msra.mxu3 %v464_v55  ;;  %536 = vmatpush.msra.mxu1 %v463_v63 }
  0x7c   : > { %566 = vmatpush.msra.mxu2 %v430_v58  ;;  %508 = vmatpush.msra.mxu0 %v429_v0 }
  0x7d   : > { %595 = vmatpush.msra.mxu3 %v462_v59  ;;  %567 = vmatmul.f32.vlgmr.msra.gmra.mxu2 %v421_v60 }
  0x7e   : > { %596 = vmatmul.f32.vlgmr.msra.gmra.mxu3 %v422_v61  ;;  %537 = vmatpush.msra.mxu1 %v461_v1 }
  0x7f   : > { %509 = vmatmul.f32.vlgmr.msra.gmra.mxu0 %v421_v60  ;;  %538 = vmatmul.f32.vlgmr.msra.gmra.mxu1 %v422_v61 }
  0x85   : > { %570 = vmatmul.f32.gmra.mxu2 %v423_v2 }
  0x86   : > { %599 = vmatmul.f32.gmra.mxu3 %v424_v3 }
  0x87   : > { %512 = vmatmul.f32.gmra.mxu0 %v423_v2  ;;  %541 = vmatmul.f32.gmra.mxu1 %v424_v3 }
  0x8d   : > { %573 = vmatmul.f32.gmra.mxu2 %v425_v4 }
  0x8e   : > { %602 = vmatmul.f32.gmra.mxu3 %v426_v5 }
  0x8f   : > { %515 = vmatmul.f32.gmra.mxu0 %v425_v4  ;;  %544 = vmatmul.f32.gmra.mxu1 %v426_v5 }
  0x95   : > { %576 = vmatmul.f32.gmra.mxu2 %v427_v6 }
  0x96   : > { %605 = vmatmul.f32.gmra.mxu3 %v428_v7 }
  0x97   : > { %518 = vmatmul.f32.gmra.mxu0 %v427_v6  ;;  %547 = vmatmul.f32.gmra.mxu1 %v428_v7 }
  0xfc   : > { %v510_v10 = vpop.f32.mrf.mxu0  ;;  %v539_v11 = vpop.f32.mrf.mxu1 }
  0xfd   : > { %v540_v12 = vadd.f32 %v539_v11, %v510_v10 }
  0xff   : > { %v642_v16 = vadd.f32 %v638_v9, %v540_v12 }
 0x100   : > { %v568_v14 = vpop.f32.mrf.mxu2 }
 0x101   : > { %v597_v15 = vpop.f32.mrf.mxu3  ;;  %650 = vst [vmem:[%s1206_s9] sm:$0xff] %v642_v16 }
 0x102   : > { %v598_v17 = vadd.f32 %v597_v15, %v568_v14 }
 0x104   : > { %v643_v18 = vadd.f32 %v639_v13, %v598_v17  ;;  %v513_v19 = vpop.f32.mrf.mxu0  ;;  %v542_v20 = vpop.f32.mrf.mxu1 }
 0x105   : > { %v543_v21 = vadd.f32 %v542_v20, %v513_v19 }
 0x106   : > { %651 = vst [vmem:[%s1206_s9 + $0x8] sm:$0xff] %v643_v18 }
 0x107   : > { %v644_v24 = vadd.f32 %v638_v9, %v543_v21 }
 0x108   : > { %v571_v22 = vpop.f32.mrf.mxu2  ;;  %v683_v43 = vld [vmem:[%s1206_s9] sm:$0xff] (%p960_p6) }
 0x109   : > { %v600_v23 = vpop.f32.mrf.mxu3  ;;  %652 = vst [vmem:[%s1206_s9 + $0x10] sm:$0xff] %v644_v24 }
 0x10a   : > { %v601_v25 = vadd.f32 %v600_v23, %v571_v22  ;;  %684 = vst [vmem:[%s670_s11] sm:$0xff] (%p960_p6), %v683_v43 }
 0x10c   : > { %v645_v26 = vadd.f32 %v639_v13, %v601_v25  ;;  %v516_v27 = vpop.f32.mrf.mxu0  ;;  %v545_v28 = vpop.f32.mrf.mxu1 }
 0x10d   : > { %v546_v29 = vadd.f32 %v545_v28, %v516_v27  ;;  %v685_v44 = vld [vmem:[%s1206_s9 + $0x8] sm:$0xff] (%p960_p6) }
 0x10e   : > { %653 = vst [vmem:[%s1206_s9 + $0x18] sm:$0xff] %v645_v26 }
 0x10f   : > { %v646_v32 = vadd.f32 %v638_v9, %v546_v29  ;;  %686 = vst [vmem:[%s670_s11 + $0x8] sm:$0xff] (%p960_p6), %v685_v44 }
 0x110   : > { %v574_v30 = vpop.f32.mrf.mxu2  ;;  %v687_v45 = vld [vmem:[%s1206_s9 + $0x10] sm:$0xff] (%p960_p6) }
 0x111   : > { %v603_v31 = vpop.f32.mrf.mxu3  ;;  %654 = vst [vmem:[%s1206_s9 + $0x20] sm:$0xff] %v646_v32 }
 0x112   : > { %v604_v33 = vadd.f32 %v603_v31, %v574_v30  ;;  %688 = vst [vmem:[%s670_s11 + $0x40] sm:$0xff] (%p960_p6), %v687_v45 }
 0x114   : > { %v647_v34 = vadd.f32 %v639_v13, %v604_v33  ;;  %v519_v35 = vpop.f32.mrf.mxu0  ;;  %v548_v36 = vpop.f32.mrf.mxu1 }
 0x115   : > { %v549_v37 = vadd.f32 %v548_v36, %v519_v35  ;;  %v689_v46 = vld [vmem:[%s1206_s9 + $0x18] sm:$0xff] (%p960_p6) }
 0x116   : > { %655 = vst [vmem:[%s1206_s9 + $0x28] sm:$0xff] %v647_v34 }
 0x117   : > { %v648_v40 = vadd.f32 %v638_v9, %v549_v37  ;;  %690 = vst [vmem:[%s670_s11 + $0x48] sm:$0xff] (%p960_p6), %v689_v46 }
 0x118   : > { %v577_v38 = vpop.f32.mrf.mxu2  ;;  %v691_v47 = vld [vmem:[%s1206_s9 + $0x20] sm:$0xff] (%p960_p6) }
 0x119   : > { %v606_v39 = vpop.f32.mrf.mxu3  ;;  %656 = vst [vmem:[%s1206_s9 + $0x30] sm:$0xff] %v648_v40 }
 0x11a   : > { %v607_v41 = vadd.f32 %v606_v39, %v577_v38  ;;  %664 = sbr.rel (!%p960_p6) target bundleno = 295 (0x127), region = 67  ;;  %692 = vst [vmem:[%s670_s11 + $0x80] sm:$0xff] (%p960_p6), %v691_v47 }
 0x11c   : > { %v649_v42 = vadd.f32 %v639_v13, %v607_v41 }
 0x11d   : > { %v693_v48 = vld [vmem:[%s1206_s9 + $0x28] sm:$0xff] (%p960_p6) }
 0x11e   : > { %657 = vst [vmem:[%s1206_s9 + $0x38] sm:$0xff] %v649_v42 }
 0x11f   : > { %694 = vst [vmem:[%s670_s11 + $0x88] sm:$0xff] %v693_v48 }
 0x120   : > { %v695_v49 = vld [vmem:[%s1206_s9 + $0x30] sm:$0xff] }
 0x121   : > { %696 = vst [vmem:[%s670_s11 + $0xc0] sm:$0xff] %v695_v49 }
 0x125   : > { %v697_v50 = vld [vmem:[%s1206_s9 + $0x38] sm:$0xff] }
 0x126   : > { %698 = vst [vmem:[%s670_s11 + $0xc8] sm:$0xff] %v697_v50 }
 0x127 PF: > { %s13_s16 = sadd.s32 1, %s903_s16   ;;  %s1250_s12 = smov %s891_s13 }
 0x128   : > { %p10_p12 = scmp.ge.s32.totalorder %s13_s16, 6   ;;  %s1251_s13 = smov %s965_s22 }
 0x129   : > { %s1252_s14 = smov %s899_s15  ;;  %s1253_s15 = smov %s1255_s17 }
 0x12a   :  { %12 = sbr.rel (!%p10_p12) target bundleno = 3 (0x3), region = 127 }

// kernel: forward.4
= control target key start
LH: loop header
LB: loop body
LE: loop exit
PB: predicated region body
PF: predicated region fallthrough
CT: control target
= control target key end

     0   :  { %s2343_s0 = inlined_call_operand.vmem [shape: f32[2,16,1024], index: 0, kind: input, shape index: {}, may-alias: {0,1,2,3}]   ;;  %s2344_s1 = inlined_call_operand.vmem [shape: f32[2,16,1024], index: 1, kind: input, shape index: {}, may-alias: {0,1,2,3}]   ;;  %s2345_s2 = inlined_call_operand.vmem [shape: f32[2,16,1024], index: 2, kind: input, shape index: {}, may-alias: {0,1,2,3}]   ;;  %s2346_s3 = inlined_call_operand.vmem [shape: f32[2,16,1024], index: 3, kind: input, shape index: {}, may-alias: {0,1,2,3}]   ;;  %s2347_s4 = inlined_call_operand.vmem [shape: f32[1,256], index: 4, kind: input, shape index: {}]   ;;  %s2348_s5 = inlined_call_operand.vmem [shape: f32[1,256], index: 5, kind: input, shape index: {}]   ;;  %s2349_s6 = inlined_call_operand.vmem [shape: f32[1,256], index: 6, kind: input, shape index: {}]   ;;  %s2350_s7 = inlined_call_operand.vmem [shape: f32[4,16,16], index: 7, kind: input, shape index: {}]   ;;  %s2351_s8 = inlined_call_operand.vmem [shape: f32[2,4,16,1], index: 8, kind: input, shape index: {}]   ;;  %s2352_s9 = inlined_call_operand.vmem [shape: f32[2,16,256], index: 9, kind: output, shape index: {0}]   ;;  %s2353_s10 = inlined_call_operand.vmem [shape: f32[2,16,256], index: 10, kind: output, shape index: {1}]  }
   0x1   :  { %2360 = sst [smem:[#allocation16_spill]] %s2347_s4 }
   0x2   :  { %2361 = sst [smem:[#allocation17_spill]] %s2348_s5 }
   0x3   :  { %2362 = sst [smem:[#allocation18_spill]] %s2349_s6 }
   0x4   :  { %2363 = sst [smem:[#allocation19_spill]] %s2350_s7 }
   0x5   :  { %2364 = sst [smem:[#allocation20_spill]] %s2351_s8 }
   0x6   :  { %2365 = sst [smem:[#allocation21_spill]] %s2352_s9 }
   0x7   :  { %2366 = sst [smem:[#allocation22_spill]] %s2353_s10 }
   0x8   :  { %s1935_s13 = smov 0   ;;  %s1937_s14 = smov 0  }
   0x9   :  { %s1939_s15 = smov 0   ;;  %s1941_s16 = smov 0  }
   0xa   :  { %s1943_s17 = smov 0   ;;  %s1945_s18 = smov 0  }
   0xb   :  { %s1947_s19 = smov 0   ;;  %s1949_s20 = smov 0  }
   0xc   :  { %s1951_s21 = smov 0   ;;  %s1953_s22 = smov 0  }
   0xd   :  { %s1955_s23 = smov 0   ;;  %s1957_s24 = smov 0  }
   0xe   :  { %s1959_s25 = smov 0  }
   0xf LB: > { %2367 = sst [smem:[#allocation8_spill]] %s1844_s17  ;;  %s30_s27 = sadd.s32 1, %s1868_s23  ;;  %s1876_s25 = sphi %s1959_s25, %s21_s25   ;;  %s1872_s24 = sphi %s1957_s24, %s2410_s24   ;;  %s1868_s23 = sphi %s1955_s23, %s2409_s23   ;;  %s1864_s22 = sphi %s1953_s22, %s2408_s22   ;;  %s1860_s21 = sphi %s1951_s21, %s2407_s21   ;;  %s1856_s20 = sphi %s1949_s20, %s2398_s20   ;;  %s1852_s19 = sphi %s1947_s19, %s2397_s19   ;;  %s1848_s18 = sphi %s1945_s18, %s2406_s18   ;;  %s1844_s17 = sphi %s1943_s17, %s2405_s17   ;;  %s1840_s16 = sphi %s1941_s16, %s2404_s16   ;;  %s1836_s15 = sphi %s1939_s15, %s2403_s15   ;;  %s1832_s14 = sphi %s1937_s14, %s2402_s14   ;;  %s1828_s13 = sphi %s1935_s13, %s2401_s13  }
  0x10   : > { %2368 = sst [smem:[#allocation9_spill]] %s1856_s20  ;;  %p31_p0 = scmp.ge.s32.totalorder %s30_s27, 2 }
  0x11   : > { %2369 = sst [smem:[#allocation10_spill]] %s1860_s21  ;;  %s33_s28 = sadd.s32 1, %s1872_s24 }
  0x12   : > { %2370 = sst [smem:[#allocation11_spill]] %s1864_s22  ;;  %s42_s29 = sadd.s32 1, %s1856_s20 }
  0x13   : > { %p49_p1 = scmp.ne.s32.totalorder %s1856_s20, %s1852_s19  ;;  %s2412_s27 = smov (%p31_p0, %s30_s27), 0 }
  0x14   : > { %2371 = sst [smem:[#allocation12_spill]] %s2412_s27  ;;  %s2414_s28 = smov (!%p31_p0, %s33_s28), %s1872_s24 }
  0x15   : > { %s2011_s30 = ssub.s32 %s1868_s23, %s2412_s27  ;;  %p50_p2 = scmp.eq.s32.totalorder %s1876_s25, 0 }
  0x16   : > { %p35_p3 = scmp.ge.s32.totalorder %s2414_s28, 2  ;;  %s65_s11 = sadd.s32 2, %s1872_s24 }
  0x17   : > { %p2020_p4 = por %p50_p2, %p49_p1  ;;  %s72_s26 = sadd.s32 1, %s1848_s18 }
  0x18   : > { %s2416_s28 = smov (%p35_p3, %s2414_s28), 0  ;;  %p79_p5 = scmp.ne.s32.totalorder %s1848_s18, %s1844_s17 }
  0x19   : > { %2373 = sst [smem:[#allocation13_spill]] %s2416_s28  ;;  %s95_s27 = sadd.s32 4, %s1872_s24 }
  0x1a   : > { %s38_s10 = ssub.s32 %s1872_s24, %s2416_s28  ;;  %s66_s9 = sadd.s32 2, %s2416_s28 }
  0x1b   : > { %s39_s6 = sor.u32 %s38_s10, %s2011_s30  ;;  %s68_s7 = ssub.s32 %s65_s11, %s66_s9 }
  0x1c   : > { %p40_p6 = scmp.eq.s32.totalorder %s39_s6, 0  ;;  %s69_s4 = sor.u32 %s68_s7, %s2011_s30 }
  0x1d   : > { %p70_p7 = scmp.eq.s32.totalorder %s69_s4, 0  ;;  %p2037_p8 = por %p79_p5, %p50_p2 }
  0x1e   : > { %s2042_s8 = scalar_select %p40_p6, %s1856_s20, %s42_s29  }
  0x1f   : > { %s2045_s21 = scalar_select %p70_p7, %s1848_s18, %s72_s26  }
  0x20   : > { %2375 = sst [smem:[#allocation14_spill]] %s2042_s8  ;;  %s96_s10 = sadd.s32 4, %s2416_s28 }
  0x21   : > { %2376 = sst [smem:[#allocation15_spill]] %s2045_s21  ;;  %s102_s9 = sadd.s32 1, %s1840_s16 }
  0x22   : > { %s98_s6 = ssub.s32 %s95_s27, %s96_s10  ;;  %p109_p9 = scmp.ne.s32.totalorder %s1840_s16, %s1836_s15 }
  0x23   : > { %s99_s4 = sor.u32 %s98_s6, %s2011_s30  ;;  %s125_s7 = sadd.s32 6, %s1872_s24 }
  0x24   : > { %p100_p10 = scmp.eq.s32.totalorder %s99_s4, 0  ;;  %p2055_p11 = por %p109_p9, %p50_p2 }
  0x25   : > { %s126_s29 = sadd.s32 6, %s2416_s28  ;;  %s132_s8 = sadd.s32 1, %s1832_s14 }
  0x26   : > { %s2062_s26 = scalar_select %p100_p10, %s1840_s16, %s102_s9  }
  0x27   : > { %s128_s21 = ssub.s32 %s125_s7, %s126_s29  ;;  %p139_p12 = scmp.ne.s32.totalorder %s1832_s14, %s1828_s13 }
  0x28   : > { %s129_s22 = sor.u32 %s128_s21, %s2011_s30  ;;  %s2378_s17 = sadd.s32 4294967295, %s1876_s25  }
  0x29   : > { %p303_p13 = scmp.eq.s32.totalorder %s2378_s17, 3  ;;  %p130_p0 = scmp.eq.s32.totalorder %s129_s22, 0 }
  0x2a   : > { %p2071_p3 = por %p139_p12, %p50_p2  ;;  %p1548_p6 = scmp.ge.s32.totalorder %s1876_s25, 4 }
  0x2b   : > { %p2078_p5 = por %p303_p13, %p49_p1 }
  0x2c   : > { %s2083_s6 = scalar_select %p130_p0, %s1832_s14, %s132_s8  }
  0x2d   : > { %353 = sbr.rel (%p1548_p6) target bundleno = 82 (0x52), region = 16 }
  0x32   : > { %356 = sbr.rel (!%p2020_p4) target bundleno = 58 (0x3a), region = 20  ;;  %s358_s17 = sand.u32 (%p2020_p4), 1, %s1856_s20  }
  0x33   : > { %s1550_s21 = sshll.u32 (%p2020_p4), %s1868_s23, 4  ;;  %s1549_s22 = sshll.u32 (%p2020_p4), %s358_s17, 4 }
  0x34   : > { %s362_s30 = sadd.s32 (%p2020_p4), %s1872_s24, %s1550_s21  ;;  %s360_s8 = scalar_lea.vmem (%p2020_p4), [#allocation2], %s1549_s22 }
  0x35   : > { %s1551_s9 = sshll.u32 (%p2020_p4), %s362_s30, 3 }
  0x36   : > { %s364_s29 = scalar_lea.vmem (%p2020_p4), %s2343_s0, %s1551_s9 }
  0x37   : > { %v395_v0 = vld [vmem:[%s364_s29] sm:$0xff] }
  0x38   : > { %v397_v1 = vld [vmem:[%s364_s29 + $0x40] sm:$0xff]  ;;  %396 = vst [vmem:[%s360_s8] sm:$0xff] %v395_v0 }
  0x39   : > { %398 = vst [vmem:[%s360_s8 + $0x8] sm:$0xff] %v397_v1 }
  0x3a PF: > { %404 = sbr.rel (!%p2037_p8) target bundleno = 66 (0x42), region = 58  ;;  %s406_s12 = sand.u32 (%p2037_p8), 1, %s1848_s18  }
  0x3b   : > { %s1553_s17 = sshll.u32 (%p2037_p8), %s1868_s23, 4  ;;  %s1552_s21 = sshll.u32 (%p2037_p8), %s406_s12, 4 }
  0x3c   : > { %s1348_s30 = sadd.s32 (%p2037_p8), %s1872_s24, %s1553_s17  ;;  %s408_s22 = scalar_lea.vmem (%p2037_p8), [#allocation3], %s1552_s21 }
  0x3d   : > { %s1554_s28 = sshll.u32 (%p2037_p8), %s1348_s30, 3 }
  0x3e   : > { %s1350_s9 = scalar_lea.vmem (%p2037_p8), %s2344_s1, %s1554_s28 }
  0x3f   : > { %v1555_v2 = vld [vmem:[%s1350_s9 + $0x10] sm:$0xff] }
  0x40   : > { %v1556_v3 = vld [vmem:[%s1350_s9 + $0x50] sm:$0xff]  ;;  %445 = vst [vmem:[%s408_s22] sm:$0xff] %v1555_v2 }
  0x41   : > { %447 = vst [vmem:[%s408_s22 + $0x8] sm:$0xff] %v1556_v3 }
  0x42 PF: > { %453 = sbr.rel (!%p2055_p11) target bundleno = 74 (0x4a), region = 96  ;;  %s455_s5 = sand.u32 (%p2055_p11), 1, %s1840_s16  }
  0x43   : > { %s1558_s7 = sshll.u32 (%p2055_p11), %s1868_s23, 4  ;;  %s1557_s29 = sshll.u32 (%p2055_p11), %s455_s5, 4 }
  0x44   : > { %s1355_s8 = sadd.s32 (%p2055_p11), %s1872_s24, %s1558_s7  ;;  %s457_s21 = scalar_lea.vmem (%p2055_p11), [#allocation4], %s1557_s29 }
  0x45   : > { %s1559_s12 = sshll.u32 (%p2055_p11), %s1355_s8, 3 }
  0x46   : > { %s1357_s28 = scalar_lea.vmem (%p2055_p11), %s2345_s2, %s1559_s12 }
  0x47   : > { %v1560_v4 = vld [vmem:[%s1357_s28 + $0x20] sm:$0xff] }
  0x48   : > { %v1561_v5 = vld [vmem:[%s1357_s28 + $0x60] sm:$0xff]  ;;  %494 = vst [vmem:[%s457_s21] sm:$0xff] %v1560_v4 }
  0x49   : > { %496 = vst [vmem:[%s457_s21 + $0x8] sm:$0xff] %v1561_v5 }
  0x4a PF: > { %502 = sbr.rel (!%p2071_p3) target bundleno = 82 (0x52), region = 134  ;;  %s504_s11 = sand.u32 (%p2071_p3), 1, %s1832_s14  }
  0x4b   : > { %s1563_s30 = sshll.u32 (%p2071_p3), %s1868_s23, 4  ;;  %s1562_s4 = sshll.u32 (%p2071_p3), %s504_s11, 4 }
  0x4c   : > { %s1362_s9 = sadd.s32 (%p2071_p3), %s1872_s24, %s1563_s30  ;;  %s506_s29 = scalar_lea.vmem (%p2071_p3), [#allocation5], %s1562_s4 }
  0x4d   : > { %s1564_s22 = sshll.u32 (%p2071_p3), %s1362_s9, 3 }
  0x4e   : > { %s1364_s8 = scalar_lea.vmem (%p2071_p3), %s2346_s3, %s1564_s22 }
  0x4f   : > { %v1565_v6 = vld [vmem:[%s1364_s8 + $0x30] sm:$0xff] }
  0x50   : > { %v1566_v7 = vld [vmem:[%s1364_s8 + $0x70] sm:$0xff]  ;;  %543 = vst [vmem:[%s506_s29] sm:$0xff] %v1565_v6 }
  0x51   : > { %545 = vst [vmem:[%s506_s29 + $0x8] sm:$0xff] %v1566_v7 }
  0x52 PF: > { %p1567_p1 = scmp.ge.s32.totalorder %s1876_s25, 1  ;;  %p592_p2 = scmp.lt.s32.totalorder %s1876_s25, 5 }
  0x54   : > { %p593_p4 = pnand %p1567_p1, %p592_p2 }
  0x55   : > { %s2381_s27 = sld [smem:[#allocation8_spill]] (!%p593_p4)  ;;  %s620_s4 = sand.u32 (!%p593_p4), 1, %s1828_s13  }
  0x56   : > { %596 = sbr.rel (%p593_p4) target bundleno = 1176 (0x498), region = 192  ;;  %s2382_s12 = sld [smem:[#allocation11_spill]] (!%p593_p4) }
  0x57   : > { %s2383_s17 = sld [smem:[#allocation10_spill]] (!%p593_p4)  ;;  %s1571_s22 = sshll.u32 (!%p593_p4), %s620_s4, 4 }
  0x58   : > { %s2386_s8 = sld [smem:[#allocation16_spill]] (!%p593_p4) }
  0x5b   : > { %s606_s20 = sand.u32 1, %s2381_s27   ;;  %vm751_vm0 = vcmask 523264   ;;  %v1878_v8 = vmov 0   ;;  %s2384_s27 = sld [smem:[#allocation20_spill]]  ;;  %vm787_vm1 = vcmask 130048   ;;  %vm1087_vm2 = vcmask 1048064  }
  0x5c   : > { %s1574_s28 = sshll.u32 %s2382_s12, 1  ;;  %s1569_s21 = sshll.u32 %s606_s20, 4  ;;  %1724 = vset.pattern.permute.xlu0 %v1878_v8  ;;  %1725 = vset.pattern.permute.xlu2 %v1878_v8 }
  0x5d   : > { %p710_p7 = scmp.lt.s32.totalorder %s1574_s28, 3  ;;  %p717_p8 = scmp.lt.s32.totalorder %s2383_s17, 1 }
  0x5e   : > { %s608_s11 = scalar_lea.vmem [#allocation3], %s1569_s21  ;;  %p700_p9 = scmp.lt.s32.totalorder %s2382_s12, 1 }
  0x5f   : > { %v748_v9 = vld [vmem:[%s608_s11 + $0x8] sm:$0xff]  ;;  %s2418_s28 = smov (!%p710_p7, %s1574_s28), 3  ;;  %s2420_s17 = smov (!%p717_p8, %s2383_s17), 1  ;;  %v747_v10 = vld [vmem:[%s608_s11] sm:$0xff] }
  0x60   : > { %1581 = vmatpush.xpose.msk.msra.mxu0 %vm751_vm0, %v748_v9  ;;  %s1578_s30 = sshll.u32 %s2418_s28, 1  ;;  %s1579_s9 = sshll.u32 %s2420_s17, 3 }
  0x61   : > { %s723_s5 = sadd.s32 %s1579_s9, %s1578_s30  ;;  %s599_s21 = sand.u32 1, %s1852_s19  }
  0x62   : > { %s1580_s7 = sshll.u32 %s723_s5, 3  ;;  %s2422_s12 = smov (!%p700_p9, %s2382_s12), 1 }
  0x63   : > { %s2134_s20 = scalar_lea.vmem %s2384_s27, %s1580_s7  ;;  %s2141_s13 = sshll.u32 %s599_s21, 4 }
  0x64   : > { %1582 = vmatpush.xpose.msk.msra.mxu0 %vm751_vm0, %v747_v10  ;;  %v727_v11 = vld [vmem:[%s2134_s20] sm:$0xff]  ;;  %s2385_s30 = sld [smem:[#allocation17_spill]]  ;;  %s622_s9 = scalar_lea.vmem [#allocation5], %s1571_s22  ;;  %v728_v20 = vld [vmem:[%s2134_s20 + $0x8] sm:$0xff]  ;;  %v1593_v32 = vld [vmem:[%s2134_s20 + $0x10] sm:$0xff] }
  0x65   : > { %733 = vperm.xlu0 %1724, %v727_v11   ;;  %v2147_v12 = vld [vmem:[%s622_s9 + $0x8] sm:$0xff]  ;;  %v2149_v13 = vld [vmem:[%s622_s9] sm:$0xff]  ;;  %s1879_s19 = smov 64   ;;  %s702_s29 = scalar_lea.vmem %s2386_s8, %s2422_s12 }
  0x66   : > { %985 = vrot.lane.b32.xlu2 %v747_v10, %s1879_s19  ;;  %s601_s27 = scalar_lea.vmem [#allocation2], %s2141_s13  ;;  %v1737_v16 = vld [vmem:[%s702_s29] ss:$0 sm:$0xff]  ;;  %s1617_s22 = sshll.u32 %s2418_s28, 4 }
  0x67   : > { %v743_v15 = vld [vmem:[%s601_s27] sm:$0xff]  ;;  %v847_v19 = vadd.f32 %v1737_v16, %v2149_v13  ;;  %v744_v22 = vld [vmem:[%s601_s27 + $0x8] sm:$0xff]  ;;  %v848_v25 = vadd.f32 %v1737_v16, %v2147_v12  ;;  %s2387_s11 = sld [smem:[#allocation19_spill]]  ;;  %s613_s28 = sand.u32 1, %s1836_s15  }
  0x68   : > { %v745_v18 = vmul.f32 0.125, %v743_v15  ;;  %v2164_v24 = vmul.f32 0.125, %v744_v22  ;;  %v1739_v29 = vld [vmem:[%s702_s29] ss:$0 sm:$0xff]  ;;  %s2388_s5 = sld [smem:[#allocation18_spill]]  ;;  %s2235_s8 = scalar_lea.vmem [#allocation6], %s2141_s13 }
  0x69   : > { %v849_v23 = vmul.f32 0.125, %v847_v19  ;;  %v850_v27 = vmul.f32 0.125, %v848_v25  ;;  %v1096_v30 = vadd.f32 %v1739_v29, %v2149_v13  ;;  %v1097_v51 = vadd.f32 %v1739_v29, %v2147_v12  ;;  %s2390_s29 = sld [smem:[#allocation11_spill]] (%p2078_p5) }
  0x6a   : > { %s705_s4 = scalar_lea.vmem %s2385_s30, %s2422_s12  ;;  %1583 = vmatmul.msk.f32.vlgmr.msra.gmra.mxu0 %vm751_vm0, %v745_v18 }
  0x6b   : > { %v1736_v14 = vld [vmem:[%s705_s4] ss:$0 sm:$0xff]  ;;  %v1098_v31 = vmul.f32 0.125, %v1096_v30  ;;  %v1099_v52 = vmul.f32 0.125, %v1097_v51 }
  0x6c   : > { %v856_v17 = vadd.f32 %v1736_v14, %v2147_v12  ;;  %v855_v21 = vadd.f32 %v1736_v14, %v2149_v13  ;;  %v1738_v26 = vld [vmem:[%s705_s4] ss:$0 sm:$0xff]  ;;  %s1570_s4 = sshll.u32 %s613_s28, 4 }
  0x6d   : > { %738 = vperm.xlu0 %1724, %v728_v20   ;;  %v1104_v28 = vadd.f32 %v1738_v26, %v2149_v13  ;;  %s2182_s30 = scalar_lea.vmem %s2387_s11, %s1617_s22  ;;  %v1105_v50 = vadd.f32 %v1738_v26, %v2147_v12  ;;  %s615_s9 = scalar_lea.vmem [#allocation4], %s1570_s4 }
  0x6e   : > { %1587 = vmatpush.xpose.msk.msra.mxu2 %vm751_vm0, %v856_v17  ;;  %v729_v33 = vld [vmem:[%s2182_s30] sm:$0xff]  ;;  %v730_v39 = vld [vmem:[%s2182_s30 + $0x8] sm:$0xff]  ;;  %s2230_s7 = scalar_lea.vmem %s2388_s5, %s2422_s12  ;;  %s2260_s12 = scalar_lea.vmem [#allocation7], %s2141_s13 }
  0x6f   : > { %v2202_v63 = vld [vmem:[%s615_s9 + $0x8] sm:$0xff]  ;;  %v2204_v0 = vld [vmem:[%s615_s9] sm:$0xff]  ;;  %s2389_s13 = sld [smem:[#allocation10_spill]] (%p2078_p5) }
  0x70   : > { %830 = vmatpush.msra.mxu1 %v2202_v63  ;;  %s2391_s11 = sld [smem:[#allocation21_spill]] (%p2078_p5) }
  0x72   : > { %1588 = vmatpush.xpose.msk.msra.mxu2 %vm751_vm0, %v855_v21  ;;  %1584 = vmatmul.msk.f32.gmra.mxu0 %vm751_vm0, %v2164_v24  ;;  %v1595_v21 = vld [vmem:[%s2182_s30 + $0x10] sm:$0xff] }
  0x73   : > { %831 = vmatpush.msra.mxu1 %v2204_v0 }
  0x75   : > { %1589 = vmatmul.msk.f32.vlgmr.msra.gmra.mxu2 %vm751_vm0, %v849_v23  ;;  %987 = vrot.lane.b32.xlu0 %v748_v9, %s1879_s19  ;;  %v1594_v9 = vld [vmem:[%s2134_s20 + $0x18] sm:$0xff]  ;;  %s1611_s27 = sshll.u32 (%p2078_p5), %s2389_s13, 2 }
  0x76   : > { %s1236_s22 = sadd.s32 (%p2078_p5), %s2390_s29, %s1611_s27 }
  0x7d   : > { %1590 = vmatmul.msk.f32.gmra.mxu2 %vm751_vm0, %v850_v27  ;;  %1120 = vrot.lane.b32.xlu0 %v1104_v28, %s1879_s19  ;;  %v1596_v27 = vld [vmem:[%s2182_s30 + $0x18] sm:$0xff] }
  0x85   : > { %979 = vrot.lane.b32.xlu0 %v745_v18, %s1879_s19 }
  0x8d   : > { %1114 = vrot.lane.b32.xlu0 %v1098_v31, %s1879_s19 }
  0x95   : > { %959 = vperm.xlu0 %1724, %v1593_v32  }
  0xc0   : > { %v986_v4 = vpop.permute.xlu2 %985 }
  0xd7   : > { %v734_v34 = vpop.permute.xlu0 %733 }
  0xd8   : > { %v741_v35 = vmul.f32 %v734_v34, %v729_v33 }
  0xdf   : > { %v739_v40 = vpop.permute.xlu0 %738 }
  0xe0   : > { %v742_v41 = vmul.f32 %v739_v40, %v730_v39 }
  0xe7   : > { %v781_v36 = vpop.f32.mrf.mxu0  ;;  %v988_v58 = vpop.permute.xlu0 %987 }
  0xe8   : > { %v782_v37 = vadd.f32 %v781_v36, %v741_v35  ;;  %1597 = vmatpush.xpose.msk.msrb.mxu1 %vm751_vm0, %v988_v58 }
  0xea   : > { %v788_v38 = vsel %vm787_vm1, %v782_v37, -inf }
  0xeb   : > { %789 = vmax.xlane.f32.xlu1 %v788_v38 }
  0xec   : > { %1598 = vmatpush.xpose.msk.msrb.mxu1 %vm751_vm0, %v986_v4 }
  0xef   : > { %v784_v42 = vpop.f32.mrf.mxu0  ;;  %v1121_v2 = vpop.permute.xlu0 %1120 }
  0xf0   : > { %v785_v43 = vadd.f32 %v784_v42, %v742_v41 }
  0xf2   : > { %v791_v44 = vsel %vm787_vm1, %v785_v43, -inf }
  0xf3   : > { %792 = vmax.xlane.f32.xlu1 %v791_v44 }
  0xf7   : > { %v980_v5 = vpop.permute.xlu0 %979 }
  0xf8   : > { %v892_v45 = vpop.f32.mrf.mxu2 }
  0xf9   : > { %v2188_v46 = vadd.f32 %v892_v45, %v741_v35 }
  0xfb   : > { %v898_v53 = vsel %vm787_vm1, %v2188_v46, -inf }
  0xff   : > { %v1115_v7 = vpop.permute.xlu0 %1114 }
 0x100   : > { %v895_v47 = vpop.f32.mrf.mxu2 }
 0x101   : > { %v2190_v48 = vadd.f32 %v895_v47, %v742_v41 }
 0x103   : > { %v901_v49 = vsel %vm787_vm1, %v2190_v48, -inf }
 0x104   : > { %902 = vmax.xlane.f32.xlu0 %v901_v49 }
 0x107   : > { %v960_v22 = vpop.permute.xlu0 %959 }
 0x10c   : > { %1122 = vrot.lane.b32.xlu1 %v1105_v50, %s1879_s19 }
 0x114   : > { %1116 = vrot.lane.b32.xlu1 %v1099_v52, %s1879_s19 }
 0x13e   : > { %899 = vmax.xlane.f32.xlu1 %v898_v53 }
 0x15e   : > { %v790_v54 = vpop.xlane.xlu1 %789 }
 0x15f   : > { %v794_v55 = vsub.f32 %v782_v37, %v790_v54  ;;  %v1740_v37 = vld [vmem:[%s2230_s7] ss:$0 sm:$0xff] }
 0x160   : > { %v862_v38 = vadd.f32 %v1740_v37, %v2147_v12  ;;  %v861_v39 = vadd.f32 %v1740_v37, %v2149_v13 }
 0x161   : > { %v796_v56 = vmul.f32 1.442695, %v794_v55 }
 0x162   : > { %940 = vmatpush.msra.mxu3 %v862_v38 }
 0x163   : > { %1742 = vpow2.f32 %v796_v56 }
 0x164   : > { %941 = vmatpush.msra.mxu3 %v861_v39 }
 0x166   : > { %v793_v57 = vpop.xlane.xlu1 %792 }
 0x167   : > { %v795_v59 = vsub.f32 %v785_v43, %v793_v57 }
 0x169   : > { %v1743_v60 = vpop.eup %1742  ;;  %v798_v61 = vmul.f32 1.442695, %v795_v59 }
 0x16a   : > { %v800_v62 = vsel %vm787_vm1, %v1743_v60, 0.0 }
 0x16b   : > { %1744 = vpow2.f32 %v798_v61  ;;  %801 = vadd.xlane.f32.xlu2 %v800_v62 }
 0x171   : > { %v1745_v1 = vpop.eup %1744 }
 0x172   : > { %v803_v3 = vsel %vm787_vm1, %v1745_v1, 0.0 }
 0x173   : > { %804 = vadd.xlane.f32.xlu2 %v803_v3 }
 0x177   : > { %v903_v41 = vpop.xlane.xlu0 %902 }
 0x178   : > { %v905_v43 = vsub.f32 %v2190_v48, %v903_v41 }
 0x17e   : > { %v1123_v6 = vpop.permute.xlu1 %1122 }
 0x17f   : > { %1603 = vmatpush.xpose.msk.msrb.mxu0 %vm751_vm0, %v1123_v6  ;;  %v1741_v6 = vld [vmem:[%s2230_s7] ss:$0 sm:$0xff] }
 0x183   : > { %1604 = vmatpush.xpose.msk.msrb.mxu0 %vm751_vm0, %v1121_v2 }
 0x186   : > { %1605 = vmatmul.msk.f32.vlgmr.msrb.gmra.mxu0 %vm751_vm0, %v1115_v7  ;;  %v1117_v8 = vpop.permute.xlu1 %1116 }
 0x18b   : > { %981 = vrot.lane.b32.xlu2 %v2164_v24, %s1879_s19  ;;  %v967_v24 = vmul.f32 %v1595_v21, %v960_v22 }
 0x18e   : > { %1606 = vmatmul.msk.f32.gmra.mxu0 %vm751_vm0, %v1117_v8 }
 0x193   : > { %964 = vperm.xlu2 %1725, %v1594_v9   ;;  %v1111_v9 = vadd.f32 %v1741_v6, %v2147_v12  ;;  %v1110_v12 = vadd.f32 %v1741_v6, %v2149_v13 }
 0x1b1   : > { %v900_v18 = vpop.xlane.xlu1 %899 }
 0x1b2   : > { %v904_v19 = vsub.f32 %v2188_v46, %v900_v18  ;;  %v908_v46 = vmul.f32 1.442695, %v905_v43 }
 0x1b4   : > { %v906_v23 = vmul.f32 1.442695, %v904_v19 }
 0x1de   : > { %v802_v10 = vpop.xlane.xlu2 %801 }
 0x1df   : > { %1746 = vrcp.f32 %v802_v10 }
 0x1e5   : > { %v1747_v11 = vpop.eup %1746 }
 0x1e6   : > { %v805_v14 = vpop.xlane.xlu2 %804  ;;  %v808_v15 = vmul.f32 %v1747_v11, %v1743_v60 }
 0x1e7   : > { %1748 = vrcp.f32 %v805_v14  ;;  %v1726_v14 = vpack.i.bf16 %v1111_v9, %v2202_v63  ;;  %v1731_v63 = vpack.i.bf16 %v1110_v12, %v2204_v0 }
 0x1e8   : > { %1585 = vmatmul.msk.f32.vlgmr.msra.gmra.mxu1 %vm787_vm1, %v808_v15  ;;  %1750 = vpow2.f32 %v906_v23 }
 0x1e9   : > { %1752 = vpow2.f32 %v908_v46 }
 0x1ed   : > { %v1749_v16 = vpop.eup %1748 }
 0x1ee   : > { %v809_v17 = vmul.f32 %v1749_v16, %v1745_v1  ;;  %v982_v20 = vpop.permute.xlu2 %981  ;;  %v1751_v31 = vpop.eup %1750 }
 0x1ef   : > { %v910_v35 = vsel %vm787_vm1, %v1751_v31, 0.0  ;;  %v1753_v48 = vpop.eup %1752 }
 0x1f0   : > { %1586 = vmatmul.msk.f32.gmra.mxu1 %vm787_vm1, %v809_v17  ;;  %v913_v60 = vsel %vm787_vm1, %v1753_v48, 0.0 }
 0x1f6   : > { %v965_v28 = vpop.permute.xlu2 %964 }
 0x1f7   : > { %v968_v30 = vmul.f32 %v1596_v27, %v965_v28 }
 0x1f8   : > { %1599 = vmatmul.msk.f32.vlgmr.msrb.gmra.mxu1 %vm751_vm0, %v980_v5 }
 0x200   : > { %1600 = vmatmul.msk.f32.gmra.mxu1 %vm751_vm0, %v982_v20 }
 0x203   : > { %v1149_v25 = vpop.f32.mrf.mxu0 }
 0x204   : > { %v1150_v26 = vadd.f32 %v1149_v25, %v967_v24 }
 0x206   : > { %v1155_v29 = vsel %vm787_vm1, %v1150_v26, -inf }
 0x207   : > { %1156 = vmax.xlane.f32.xlu1 %v1155_v29 }
 0x20b   : > { %v1152_v32 = vpop.f32.mrf.mxu0 }
 0x20c   : > { %v1153_v33 = vadd.f32 %v1152_v32, %v968_v30 }
 0x20e   : > { %v1158_v34 = vsel %vm787_vm1, %v1153_v33, -inf }
 0x20f   : > { %1159 = vmax.xlane.f32.xlu0 %v1158_v34  ;;  %911 = vadd.xlane.f32.xlu1 %v910_v35 }
 0x265   : > { %v833_v36 = vpop.f32.mrf.mxu1 }
 0x266   : > { %839 = vst.msk [vmem:[%s2235_s8] sm:$0xff] %vm751_vm0, %v833_v36 }
 0x26d   : > { %v836_v40 = vpop.f32.mrf.mxu1 }
 0x26e   : > { %840 = vst.msk [vmem:[%s2235_s8 + $0x8] sm:$0xff] %vm751_vm0, %v836_v40 }
 0x275   : > { %v1014_v42 = vpop.f32.mrf.mxu1 }
 0x276   : > { %v1015_v44 = vadd.f32 %v1014_v42, %v967_v24 }
 0x278   : > { %v1020_v45 = vsel %vm787_vm1, %v1015_v44, -inf }
 0x279   : > { %1021 = vmax.xlane.f32.xlu2 %v1020_v45 }
 0x27a   : > { %v1157_v47 = vpop.xlane.xlu1 %1156 }
 0x27b   : > { %v1161_v49 = vsub.f32 %v1150_v26, %v1157_v47 }
 0x27d   : > { %v1163_v50 = vmul.f32 1.442695, %v1161_v49  ;;  %v1017_v51 = vpop.f32.mrf.mxu1 }
 0x27e   : > { %v1018_v52 = vadd.f32 %v1017_v51, %v968_v30 }
 0x27f   : > { %1754 = vpow2.f32 %v1163_v50 }
 0x280   : > { %v1023_v53 = vsel %vm787_vm1, %v1018_v52, -inf }
 0x281   : > { %1024 = vmax.xlane.f32.xlu2 %v1023_v53 }
 0x282   : > { %v1160_v54 = vpop.xlane.xlu0 %1159  ;;  %v912_v55 = vpop.xlane.xlu1 %911 }
 0x283   : > { %v1162_v56 = vsub.f32 %v1153_v33, %v1160_v54  ;;  %1756 = vrcp.f32 %v912_v55 }
 0x285   : > { %v1755_v57 = vpop.eup %1754  ;;  %v1165_v58 = vmul.f32 1.442695, %v1162_v56 }
 0x286   : > { %v1167_v59 = vsel %vm787_vm1, %v1755_v57, 0.0 }
 0x287   : > { %1758 = vpow2.f32 %v1165_v58  ;;  %1168 = vadd.xlane.f32.xlu1 %v1167_v59 }
 0x289   : > { %v1757_v61 = vpop.eup %1756  ;;  %914 = vadd.xlane.f32.xlu2 %v913_v60 }
 0x28a   : > { %v918_v62 = vmul.f32 %v1757_v61, %v1751_v31 }
 0x28c   : > { %1591 = vmatmul.msk.f32.vlgmr.msra.gmra.mxu3 %vm787_vm1, %v918_v62 }
 0x28d   : > { %v1759_v1 = vpop.eup %1758 }
 0x28e   : > { %v1170_v2 = vsel %vm787_vm1, %v1759_v1, 0.0 }
 0x28f   : > { %1171 = vadd.xlane.f32.xlu1 %v1170_v2 }
 0x2a1   : > { %1727 = vrot.lane.b32.xlu2 %v1726_v14, %s1879_s19 }
 0x2ec   : > { %v1022_v3 = vpop.xlane.xlu2 %1021 }
 0x2ed   : > { %v1026_v4 = vsub.f32 %v1015_v44, %v1022_v3 }
 0x2ef   : > { %v1028_v5 = vmul.f32 1.442695, %v1026_v4 }
 0x2f1   : > { %1760 = vpow2.f32 %v1028_v5 }
 0x2f4   : > { %v1025_v7 = vpop.xlane.xlu2 %1024 }
 0x2f5   : > { %v1027_v8 = vsub.f32 %v1018_v52, %v1025_v7 }
 0x2f7   : > { %v1761_v10 = vpop.eup %1760  ;;  %v1030_v11 = vmul.f32 1.442695, %v1027_v8 }
 0x2f8   : > { %v1032_v15 = vsel %vm787_vm1, %v1761_v10, 0.0 }
 0x2f9   : > { %1762 = vpow2.f32 %v1030_v11  ;;  %1033 = vadd.xlane.f32.xlu0 %v1032_v15 }
 0x2fa   : > { %v1169_v26 = vpop.xlane.xlu1 %1168 }
 0x2fc   : > { %v915_v16 = vpop.xlane.xlu2 %914 }
 0x2fd   : > { %1764 = vrcp.f32 %v915_v16 }
 0x2fe   : > { %1766 = vrcp.f32 %v1169_v26 }
 0x2ff   : > { %v1763_v17 = vpop.eup %1762 }
 0x300   : > { %v1035_v18 = vsel %vm787_vm1, %v1763_v17, 0.0 }
 0x301   : > { %1036 = vadd.xlane.f32.xlu0 %v1035_v18 }
 0x302   : > { %v1172_v27 = vpop.xlane.xlu1 %1171 }
 0x303   : > { %v1765_v19 = vpop.eup %1764 }
 0x304   : > { %v919_v20 = vmul.f32 %v1765_v19, %v1753_v48  ;;  %v1728_v22 = vpop.permute.xlu2 %1727  ;;  %v1767_v28 = vpop.eup %1766 }
 0x305   : > { %v1729_v23 = vunpack.i.l.bf16 %v1728_v22  ;;  %v1730_v24 = vunpack.i.h.bf16 %v1728_v22  ;;  %v1175_v34 = vmul.f32 %v1767_v28, %v1755_v57 }
 0x306   : > { %1592 = vmatmul.msk.f32.gmra.mxu3 %vm787_vm1, %v919_v20 }
 0x307   : > { %1070 = vmatpush.msrb.mxu3 %v1729_v23  ;;  %1205 = vmatpush.msrb.mxu2 %v1730_v24 }
 0x30f   : > { %v943_v21 = vpop.f32.mrf.mxu3 }
 0x310   : > { %949 = vst.msk [vmem:[%s2260_s12] sm:$0xff] %vm751_vm0, %v943_v21 }
 0x315   : > { %1732 = vrot.lane.b32.xlu0 %v1731_v63, %s1879_s19 }
 0x36c   : > { %v1034_v25 = vpop.xlane.xlu0 %1033 }
 0x36d   : > { %1768 = vrcp.f32 %v1034_v25 }
 0x36e   : > { %1770 = vrcp.f32 %v1172_v27 }
 0x373   : > { %v1769_v29 = vpop.eup %1768 }
 0x374   : > { %v1037_v13 = vpop.xlane.xlu0 %1036  ;;  %v1040_v33 = vmul.f32 %v1769_v29, %v1761_v10  ;;  %v1771_v35 = vpop.eup %1770 }
 0x375   : > { %1772 = vrcp.f32 %v1037_v13  ;;  %v1176_v38 = vmul.f32 %v1771_v35, %v1759_v1 }
 0x37b   : > { %v1773_v36 = vpop.eup %1772 }
 0x37c   : > { %v1041_v37 = vmul.f32 %v1773_v36, %v1763_v17 }
 0x387   : > { %v1733_v30 = vpop.permute.xlu0 %1732 }
 0x388   : > { %v1734_v0 = vunpack.i.l.bf16 %v1733_v30  ;;  %v1735_v31 = vunpack.i.h.bf16 %v1733_v30 }
 0x389   : > { %v946_v32 = vpop.f32.mrf.mxu3 }
 0x38a   : > { %950 = vst.msk [vmem:[%s2260_s12 + $0x8] sm:$0xff] %vm751_vm0, %v946_v32  ;;  %1071 = vmatpush.msrb.mxu3 %v1734_v0  ;;  %1206 = vmatpush.msrb.mxu2 %v1735_v31 }
 0x38b   : > { %1601 = vmatmul.msk.f32.vlgmr.msrb.gmra.mxu3 %vm787_vm1, %v1040_v33  ;;  %1607 = vmatmul.msk.f32.vlgmr.msrb.gmra.mxu2 %vm787_vm1, %v1175_v34 }
 0x393   : > { %1602 = vmatmul.msk.f32.gmra.mxu3 %vm787_vm1, %v1041_v37  ;;  %1608 = vmatmul.msk.f32.gmra.mxu2 %vm787_vm1, %v1176_v38 }
 0x40e   : > { %v1073_v39 = vpop.f32.mrf.mxu3  ;;  %v1208_v40 = vpop.f32.mrf.mxu2 }
 0x40f   : > { %1081 = vrot.lane.b32.xlu1 %v1073_v39, %s1879_s19  ;;  %1216 = vrot.lane.b32.xlu0 %v1208_v40, %s1879_s19 }
 0x416   : > { %v1076_v41 = vpop.f32.mrf.mxu3  ;;  %v1211_v42 = vpop.f32.mrf.mxu2 }
 0x417   : > { %1083 = vrot.lane.b32.xlu2 %v1076_v41, %s1879_s19 }
 0x41f   : > { %1218 = vrot.lane.b32.xlu2 %v1211_v42, %s1879_s19  ;;  %s1612_s19 = sshll.u32 (%p2078_p5), %s1236_s22, 3 }
 0x420   : > { %s1238_s30 = scalar_lea.vmem (%p2078_p5), %s2391_s11, %s1612_s19 }
 0x471   : > { %v1084_v43 = vpop.permute.xlu2 %1083 }
 0x472   : > { %1089 = vst.msk [vmem:[%s2235_s8 + $0x8] sm:$0xff] %vm1087_vm2, %v1084_v43 }
 0x479   : > { %v1219_v44 = vpop.permute.xlu2 %1218  ;;  %v1271_v49 = vld [vmem:[%s2235_s8 + $0x8] sm:$0xff] (%p2078_p5) }
 0x47a   : > { %1223 = vst.msk [vmem:[%s2260_s12 + $0x8] sm:$0xff] %vm1087_vm2, %v1219_v44 }
 0x47b   : > { %1272 = vst [vmem:[%s1238_s30 + $0x10] sm:$0xff] (%p2078_p5), %v1271_v49 }
 0x47f   : > { %1234 = sbr.rel (!%p2078_p5) target bundleno = 1164 (0x48c), region = 212 }
 0x481   : > { %v1217_v45 = vpop.permute.xlu0 %1216  ;;  %v1082_v46 = vpop.permute.xlu1 %1081 }
 0x482   : > { %1222 = vst.msk [vmem:[%s2260_s12] sm:$0xff] %vm1087_vm2, %v1217_v45 }
 0x483   : > { %1088 = vst.msk [vmem:[%s2235_s8] sm:$0xff] %vm1087_vm2, %v1082_v46 }
 0x48a   : > { %v1269_v47 = vld [vmem:[%s2235_s8] sm:$0xff] }
 0x48b   : > { %1270 = vst [vmem:[%s1238_s30] sm:$0xff] %v1269_v47 }
 0x48c PF: > { %1278 = sbr.rel (!%p2078_p5) target bundleno = 1176 (0x498), region = 250  ;;  %s2392_s28 = sld [smem:[#allocation10_spill]] (%p2078_p5)  ;;  %v1315_v51 = vld [vmem:[%s2260_s12 + $0x8] sm:$0xff] (%p2078_p5) }
 0x48d   : > { %s2393_s4 = sld [smem:[#allocation11_spill]] (%p2078_p5) }
 0x48e   : > { %s2394_s8 = sld [smem:[#allocation22_spill]] (%p2078_p5) }
 0x491   : > { %v1313_v50 = vld [vmem:[%s2260_s12] sm:$0xff] }
 0x492   : > { %s1613_s9 = sshll.u32 %s2392_s28, 2 }
 0x493   : > { %s1280_s15 = sadd.s32 %s2393_s4, %s1613_s9 }
 0x494   : > { %s1614_s20 = sshll.u32 %s1280_s15, 3 }
 0x495   : > { %s1282_s13 = scalar_lea.vmem %s2394_s8, %s1614_s20 }
 0x496   : > { %1314 = vst [vmem:[%s1282_s13] sm:$0xff] %v1313_v50 }
 0x497   : > { %1316 = vst [vmem:[%s1282_s13 + $0x10] sm:$0xff] %v1315_v51 }
 0x498 PF: > { %s21_s25 = sadd.s32 1, %s1876_s25   ;;  %s2396_s12 = sld [smem:[#allocation15_spill]] }
 0x499   : > { %p2299_p10 = scmp.ge.s32.totalorder %s21_s25, 6   ;;  %s2397_s19 = sld [smem:[#allocation9_spill]] }
 0x49a   : > { %s2398_s20 = sld [smem:[#allocation14_spill]]  ;;  %s2401_s13 = smov %s1832_s14 }
 0x49b   : > { %s2399_s29 = sld [smem:[#allocation12_spill]]  ;;  %s2402_s14 = smov %s2083_s6 }
 0x49c   : > { %s2400_s27 = sld [smem:[#allocation13_spill]]  ;;  %s2403_s15 = smov %s1840_s16 }
 0x49d   : > { %s2404_s16 = smov %s2062_s26  ;;  %s2405_s17 = smov %s1848_s18 }
 0x49e   : > { %s2406_s18 = smov %s2396_s12  ;;  %s2407_s21 = smov %s1868_s23 }
 0x49f   : > { %s2408_s22 = smov %s1872_s24  ;;  %20 = sbr.rel (!%p2299_p10) target bundleno = 15 (0xf), region = 372 }
 0x4a1   : > { %s2409_s23 = smov %s2399_s29 }
 0x4a2   : > { %s2410_s24 = smov %s2400_s27 }

// kernel: forward.5
= control target key start
LH: loop header
LB: loop body
LE: loop exit
PB: predicated region body
PF: predicated region fallthrough
CT: control target
= control target key end

     0   :  { %s1008_s0 = inlined_call_operand.vmem [shape: f32[32,256], index: 0, kind: input, shape index: {}]   ;;  %s1009_s1 = inlined_call_operand.vmem [shape: f32[256,256], index: 1, kind: input, shape index: {}]   ;;  %s1010_s2 = inlined_call_operand.vmem [shape: f32[32,256], index: 2, kind: input, shape index: {}]   ;;  %s1011_s3 = inlined_call_operand.vmem [shape: f32[256,256], index: 3, kind: input, shape index: {}]   ;;  %s1012_s4 = inlined_call_operand.vmem [shape: f32[1,256], index: 4, kind: input, shape index: {}]   ;;  %s1013_s5 = inlined_call_operand.hbm [shape: f32[32,256], index: 5, kind: output, shape index: {}]  }
   0x1   :  { %v79_v0 = vld [vmem:[%s1009_s1 + $0xf0] sm:$0xff]  ;;  %v80_v2 = vld [vmem:[%s1009_s1 + $0xf8] sm:$0xff]  ;;  %v77_v4 = vld [vmem:[%s1009_s1 + $0xe0] sm:$0xff] }
   0x2   :  { %v111_v1 = vld [vmem:[%s1009_s1 + $0x1f0] sm:$0xff]  ;;  %113 = vmatpush.msra.mxu0 %v79_v0  ;;  %v112_v3 = vld [vmem:[%s1009_s1 + $0x1f8] sm:$0xff]  ;;  %v109_v5 = vld [vmem:[%s1009_s1 + $0x1e0] sm:$0xff]  ;;  %171 = vmatpush.msra.mxu2 %v80_v2 }
   0x3   :  { %142 = vmatpush.msra.mxu1 %v111_v1  ;;  %200 = vmatpush.msra.mxu3 %v112_v3  ;;  %v78_v6 = vld [vmem:[%s1009_s1 + $0xe8] sm:$0xff]  ;;  %v75_v8 = vld [vmem:[%s1009_s1 + $0xd0] sm:$0xff]  ;;  %v76_v10 = vld [vmem:[%s1009_s1 + $0xd8] sm:$0xff] }
   0x4   :  { %v110_v7 = vld [vmem:[%s1009_s1 + $0x1e8] sm:$0xff]  ;;  %114 = vmatpush.msra.mxu0 %v77_v4  ;;  %v107_v9 = vld [vmem:[%s1009_s1 + $0x1d0] sm:$0xff]  ;;  %v108_v11 = vld [vmem:[%s1009_s1 + $0x1d8] sm:$0xff]  ;;  %172 = vmatpush.msra.mxu2 %v78_v6 }
   0x5   :  { %143 = vmatpush.msra.mxu1 %v109_v5  ;;  %201 = vmatpush.msra.mxu3 %v110_v7  ;;  %v73_v12 = vld [vmem:[%s1009_s1 + $0xc0] sm:$0xff]  ;;  %v74_v14 = vld [vmem:[%s1009_s1 + $0xc8] sm:$0xff]  ;;  %v71_v16 = vld [vmem:[%s1009_s1 + $0xb0] sm:$0xff] }
   0x6   :  { %v105_v13 = vld [vmem:[%s1009_s1 + $0x1c0] sm:$0xff]  ;;  %115 = vmatpush.msra.mxu0 %v75_v8  ;;  %v106_v15 = vld [vmem:[%s1009_s1 + $0x1c8] sm:$0xff]  ;;  %173 = vmatpush.msra.mxu2 %v76_v10  ;;  %v103_v17 = vld [vmem:[%s1009_s1 + $0x1b0] sm:$0xff] }
   0x7   :  { %144 = vmatpush.msra.mxu1 %v107_v9  ;;  %202 = vmatpush.msra.mxu3 %v108_v11  ;;  %v72_v18 = vld [vmem:[%s1009_s1 + $0xb8] sm:$0xff]  ;;  %v69_v20 = vld [vmem:[%s1009_s1 + $0xa0] sm:$0xff]  ;;  %v70_v22 = vld [vmem:[%s1009_s1 + $0xa8] sm:$0xff] }
   0x8   :  { %116 = vmatpush.msra.mxu0 %v73_v12  ;;  %v104_v19 = vld [vmem:[%s1009_s1 + $0x1b8] sm:$0xff]  ;;  %174 = vmatpush.msra.mxu2 %v74_v14  ;;  %v101_v21 = vld [vmem:[%s1009_s1 + $0x1a0] sm:$0xff]  ;;  %v102_v23 = vld [vmem:[%s1009_s1 + $0x1a8] sm:$0xff] }
   0x9   :  { %145 = vmatpush.msra.mxu1 %v105_v13  ;;  %203 = vmatpush.msra.mxu3 %v106_v15  ;;  %v67_v24 = vld [vmem:[%s1009_s1 + $0x90] sm:$0xff]  ;;  %v68_v26 = vld [vmem:[%s1009_s1 + $0x98] sm:$0xff]  ;;  %v65_v28 = vld [vmem:[%s1009_s1 + $0x80] sm:$0xff] }
   0xa   :  { %117 = vmatpush.msra.mxu0 %v71_v16  ;;  %175 = vmatpush.msra.mxu2 %v72_v18  ;;  %v99_v25 = vld [vmem:[%s1009_s1 + $0x190] sm:$0xff]  ;;  %v100_v27 = vld [vmem:[%s1009_s1 + $0x198] sm:$0xff]  ;;  %v97_v29 = vld [vmem:[%s1009_s1 + $0x180] sm:$0xff] }
   0xb   :  { %146 = vmatpush.msra.mxu1 %v103_v17  ;;  %204 = vmatpush.msra.mxu3 %v104_v19  ;;  %v66_v30 = vld [vmem:[%s1009_s1 + $0x88] sm:$0xff]  ;;  %v63_v32 = vld [vmem:[%s1009_s1 + $0x70] sm:$0xff]  ;;  %v64_v34 = vld [vmem:[%s1009_s1 + $0x78] sm:$0xff] }
   0xc   :  { %118 = vmatpush.msra.mxu0 %v69_v20  ;;  %176 = vmatpush.msra.mxu2 %v70_v22  ;;  %v98_v31 = vld [vmem:[%s1009_s1 + $0x188] sm:$0xff]  ;;  %v95_v33 = vld [vmem:[%s1009_s1 + $0x170] sm:$0xff]  ;;  %v96_v35 = vld [vmem:[%s1009_s1 + $0x178] sm:$0xff] }
   0xd   :  { %147 = vmatpush.msra.mxu1 %v101_v21  ;;  %205 = vmatpush.msra.mxu3 %v102_v23  ;;  %v61_v36 = vld [vmem:[%s1009_s1 + $0x60] sm:$0xff]  ;;  %v62_v38 = vld [vmem:[%s1009_s1 + $0x68] sm:$0xff]  ;;  %v59_v40 = vld [vmem:[%s1009_s1 + $0x50] sm:$0xff] }
   0xe   :  { %119 = vmatpush.msra.mxu0 %v67_v24  ;;  %177 = vmatpush.msra.mxu2 %v68_v26  ;;  %v93_v37 = vld [vmem:[%s1009_s1 + $0x160] sm:$0xff]  ;;  %v94_v39 = vld [vmem:[%s1009_s1 + $0x168] sm:$0xff]  ;;  %v91_v41 = vld [vmem:[%s1009_s1 + $0x150] sm:$0xff] }
   0xf   :  { %148 = vmatpush.msra.mxu1 %v99_v25  ;;  %206 = vmatpush.msra.mxu3 %v100_v27  ;;  %v60_v42 = vld [vmem:[%s1009_s1 + $0x58] sm:$0xff]  ;;  %v57_v44 = vld [vmem:[%s1009_s1 + $0x40] sm:$0xff]  ;;  %v58_v46 = vld [vmem:[%s1009_s1 + $0x48] sm:$0xff] }
  0x10   :  { %120 = vmatpush.msra.mxu0 %v65_v28  ;;  %178 = vmatpush.msra.mxu2 %v66_v30  ;;  %v92_v43 = vld [vmem:[%s1009_s1 + $0x158] sm:$0xff]  ;;  %v89_v45 = vld [vmem:[%s1009_s1 + $0x140] sm:$0xff]  ;;  %v90_v47 = vld [vmem:[%s1009_s1 + $0x148] sm:$0xff] }
  0x11   :  { %149 = vmatpush.msra.mxu1 %v97_v29  ;;  %207 = vmatpush.msra.mxu3 %v98_v31  ;;  %v55_v48 = vld [vmem:[%s1009_s1 + $0x30] sm:$0xff]  ;;  %v56_v50 = vld [vmem:[%s1009_s1 + $0x38] sm:$0xff]  ;;  %v53_v52 = vld [vmem:[%s1009_s1 + $0x20] sm:$0xff] }
  0x12   :  { %121 = vmatpush.msra.mxu0 %v63_v32  ;;  %179 = vmatpush.msra.mxu2 %v64_v34  ;;  %v87_v49 = vld [vmem:[%s1009_s1 + $0x130] sm:$0xff]  ;;  %v88_v51 = vld [vmem:[%s1009_s1 + $0x138] sm:$0xff]  ;;  %v85_v53 = vld [vmem:[%s1009_s1 + $0x120] sm:$0xff] }
  0x13   :  { %150 = vmatpush.msra.mxu1 %v95_v33  ;;  %208 = vmatpush.msra.mxu3 %v96_v35  ;;  %v54_v54 = vld [vmem:[%s1009_s1 + $0x28] sm:$0xff]  ;;  %v51_v56 = vld [vmem:[%s1009_s1 + $0x10] sm:$0xff]  ;;  %v52_v58 = vld [vmem:[%s1009_s1 + $0x18] sm:$0xff] }
  0x14   :  { %122 = vmatpush.msra.mxu0 %v61_v36  ;;  %180 = vmatpush.msra.mxu2 %v62_v38  ;;  %v86_v55 = vld [vmem:[%s1009_s1 + $0x128] sm:$0xff]  ;;  %v83_v57 = vld [vmem:[%s1009_s1 + $0x110] sm:$0xff]  ;;  %v84_v59 = vld [vmem:[%s1009_s1 + $0x118] sm:$0xff] }
  0x15   :  { %151 = vmatpush.msra.mxu1 %v93_v37  ;;  %209 = vmatpush.msra.mxu3 %v94_v39  ;;  %v49_v60 = vld [vmem:[%s1009_s1] sm:$0xff]  ;;  %v50_v62 = vld [vmem:[%s1009_s1 + $0x8] sm:$0xff]  ;;  %v292_v2 = vld [vmem:[%s1011_s3 + $0xf8] sm:$0xff] }
  0x16   :  { %123 = vmatpush.msra.mxu0 %v59_v40  ;;  %181 = vmatpush.msra.mxu2 %v60_v42  ;;  %v81_v61 = vld [vmem:[%s1009_s1 + $0x100] sm:$0xff]  ;;  %v82_v63 = vld [vmem:[%s1009_s1 + $0x108] sm:$0xff]  ;;  %v324_v3 = vld [vmem:[%s1011_s3 + $0x1f8] sm:$0xff] }
  0x17   :  { %152 = vmatpush.msra.mxu1 %v91_v41  ;;  %210 = vmatpush.msra.mxu3 %v92_v43  ;;  %v41_v0 = vld [vmem:[%s1008_s0] sm:$0xff]  ;;  %v42_v1 = vld [vmem:[%s1008_s0 + $0x8] sm:$0xff]  ;;  %v291_v4 = vld [vmem:[%s1011_s3 + $0xf0] sm:$0xff] }
  0x18   :  { %124 = vmatpush.msra.mxu0 %v57_v44  ;;  %182 = vmatpush.msra.mxu2 %v58_v46  ;;  %v323_v5 = vld [vmem:[%s1011_s3 + $0x1f0] sm:$0xff]  ;;  %v290_v6 = vld [vmem:[%s1011_s3 + $0xe8] sm:$0xff]  ;;  %v289_v8 = vld [vmem:[%s1011_s3 + $0xe0] sm:$0xff] }
  0x19   :  { %153 = vmatpush.msra.mxu1 %v89_v45  ;;  %211 = vmatpush.msra.mxu3 %v90_v47  ;;  %v322_v7 = vld [vmem:[%s1011_s3 + $0x1e8] sm:$0xff]  ;;  %v321_v9 = vld [vmem:[%s1011_s3 + $0x1e0] sm:$0xff]  ;;  %v288_v10 = vld [vmem:[%s1011_s3 + $0xd8] sm:$0xff] }
  0x1a   :  { %125 = vmatpush.msra.mxu0 %v55_v48  ;;  %183 = vmatpush.msra.mxu2 %v56_v50  ;;  %v320_v11 = vld [vmem:[%s1011_s3 + $0x1d8] sm:$0xff]  ;;  %v287_v12 = vld [vmem:[%s1011_s3 + $0xd0] sm:$0xff]  ;;  %v286_v14 = vld [vmem:[%s1011_s3 + $0xc8] sm:$0xff] }
  0x1b   :  { %154 = vmatpush.msra.mxu1 %v87_v49  ;;  %212 = vmatpush.msra.mxu3 %v88_v51  ;;  %v319_v13 = vld [vmem:[%s1011_s3 + $0x1d0] sm:$0xff]  ;;  %v318_v15 = vld [vmem:[%s1011_s3 + $0x1c8] sm:$0xff]  ;;  %v285_v16 = vld [vmem:[%s1011_s3 + $0xc0] sm:$0xff] }
  0x1c   :  { %126 = vmatpush.msra.mxu0 %v53_v52  ;;  %184 = vmatpush.msra.mxu2 %v54_v54  ;;  %v317_v17 = vld [vmem:[%s1011_s3 + $0x1c0] sm:$0xff]  ;;  %v43_v18 = vld [vmem:[%s1008_s0 + $0x10] sm:$0xff]  ;;  %v44_v19 = vld [vmem:[%s1008_s0 + $0x18] sm:$0xff] }
  0x1d   :  { %155 = vmatpush.msra.mxu1 %v85_v53  ;;  %213 = vmatpush.msra.mxu3 %v86_v55  ;;  %v284_v20 = vld [vmem:[%s1011_s3 + $0xb8] sm:$0xff]  ;;  %v283_v22 = vld [vmem:[%s1011_s3 + $0xb0] sm:$0xff]  ;;  %v282_v24 = vld [vmem:[%s1011_s3 + $0xa8] sm:$0xff] }
  0x1e   :  { %127 = vmatpush.msra.mxu0 %v51_v56  ;;  %185 = vmatpush.msra.mxu2 %v52_v58  ;;  %v316_v21 = vld [vmem:[%s1011_s3 + $0x1b8] sm:$0xff]  ;;  %v315_v23 = vld [vmem:[%s1011_s3 + $0x1b0] sm:$0xff]  ;;  %v314_v25 = vld [vmem:[%s1011_s3 + $0x1a8] sm:$0xff] }
  0x1f   :  { %156 = vmatpush.msra.mxu1 %v83_v57  ;;  %214 = vmatpush.msra.mxu3 %v84_v59  ;;  %v281_v26 = vld [vmem:[%s1011_s3 + $0xa0] sm:$0xff]  ;;  %v280_v28 = vld [vmem:[%s1011_s3 + $0x98] sm:$0xff] }
  0x20   :  { %128 = vmatpush.msra.mxu0 %v49_v60  ;;  %186 = vmatpush.msra.mxu2 %v50_v62  ;;  %v313_v27 = vld [vmem:[%s1011_s3 + $0x1a0] sm:$0xff]  ;;  %v312_v29 = vld [vmem:[%s1011_s3 + $0x198] sm:$0xff] }
  0x21   :  { %157 = vmatpush.msra.mxu1 %v81_v61  ;;  %215 = vmatpush.msra.mxu3 %v82_v63 }
  0x22   :  { %129 = vmatmul.f32.vlgmr.msra.gmra.mxu0 %v41_v0  ;;  %158 = vmatmul.f32.vlgmr.msra.gmra.mxu1 %v42_v1 }
  0x23   :  { %187 = vmatmul.f32.vlgmr.msra.gmra.mxu2 %v41_v0  ;;  %216 = vmatmul.f32.vlgmr.msra.gmra.mxu3 %v42_v1 }
  0x24   :  { %383 = vmatpush.msrb.mxu2 %v292_v2  ;;  %412 = vmatpush.msrb.mxu3 %v324_v3 }
  0x25   :  { %325 = vmatpush.msrb.mxu0 %v291_v4  ;;  %354 = vmatpush.msrb.mxu1 %v323_v5 }
  0x26   :  { %384 = vmatpush.msrb.mxu2 %v290_v6  ;;  %413 = vmatpush.msrb.mxu3 %v322_v7 }
  0x27   :  { %326 = vmatpush.msrb.mxu0 %v289_v8  ;;  %355 = vmatpush.msrb.mxu1 %v321_v9 }
  0x28   :  { %385 = vmatpush.msrb.mxu2 %v288_v10  ;;  %414 = vmatpush.msrb.mxu3 %v320_v11 }
  0x29   :  { %327 = vmatpush.msrb.mxu0 %v287_v12  ;;  %356 = vmatpush.msrb.mxu1 %v319_v13 }
  0x2a   :  { %386 = vmatpush.msrb.mxu2 %v286_v14  ;;  %415 = vmatpush.msrb.mxu3 %v318_v15 }
  0x2b   :  { %328 = vmatpush.msrb.mxu0 %v285_v16  ;;  %357 = vmatpush.msrb.mxu1 %v317_v17 }
  0x2c   :  { %132 = vmatmul.f32.gmra.mxu0 %v43_v18  ;;  %161 = vmatmul.f32.gmra.mxu1 %v44_v19 }
  0x2d   :  { %190 = vmatmul.f32.gmra.mxu2 %v43_v18  ;;  %219 = vmatmul.f32.gmra.mxu3 %v44_v19 }
  0x2e   :  { %387 = vmatpush.msrb.mxu2 %v284_v20  ;;  %416 = vmatpush.msrb.mxu3 %v316_v21 }
  0x2f   :  { %329 = vmatpush.msrb.mxu0 %v283_v22  ;;  %358 = vmatpush.msrb.mxu1 %v315_v23 }
  0x30   :  { %10 = vsyncpa [#allocation4], 0  ;;  %388 = vmatpush.msrb.mxu2 %v282_v24  ;;  %417 = vmatpush.msrb.mxu3 %v314_v25  ;;  %v279_v30 = vld [vmem:[%s1011_s3 + $0x90] sm:$0xff]  ;;  %v278_v32 = vld [vmem:[%s1011_s3 + $0x88] sm:$0xff]  ;;  %s496_s26 = sshll.u32 %s1013_s5, 4  ;;  %s538_s27 = smov 256   ;;  %s497_s26 = int_to_ptr.hbm [resolvable:$true] %s496_s26 }
  0x31   :  { %v311_v31 = vld [vmem:[%s1011_s3 + $0x190] sm:$0xff]  ;;  %330 = vmatpush.msrb.mxu0 %v281_v26  ;;  %359 = vmatpush.msrb.mxu1 %v313_v27  ;;  %v310_v33 = vld [vmem:[%s1011_s3 + $0x188] sm:$0xff]  ;;  %v277_v34 = vld [vmem:[%s1011_s3 + $0x80] sm:$0xff]  ;;  %s539_s1 = smov 16  }
  0x32   :  { %389 = vmatpush.msrb.mxu2 %v280_v28  ;;  %418 = vmatpush.msrb.mxu3 %v312_v29  ;;  %v309_v35 = vld [vmem:[%s1011_s3 + $0x180] sm:$0xff]  ;;  %v46_v37 = vld [vmem:[%s1008_s0 + $0x28] sm:$0xff]  ;;  %v276_v38 = vld [vmem:[%s1011_s3 + $0x78] sm:$0xff] }
  0x33   :  { %331 = vmatpush.msrb.mxu0 %v279_v30  ;;  %360 = vmatpush.msrb.mxu1 %v311_v31  ;;  %v45_v36 = vld [vmem:[%s1008_s0 + $0x20] sm:$0xff]  ;;  %v308_v39 = vld [vmem:[%s1011_s3 + $0x178] sm:$0xff]  ;;  %v275_v40 = vld [vmem:[%s1011_s3 + $0x70] sm:$0xff] }
  0x34   :  { %390 = vmatpush.msrb.mxu2 %v278_v32  ;;  %419 = vmatpush.msrb.mxu3 %v310_v33  ;;  %v307_v41 = vld [vmem:[%s1011_s3 + $0x170] sm:$0xff]  ;;  %v274_v42 = vld [vmem:[%s1011_s3 + $0x68] sm:$0xff]  ;;  %v273_v44 = vld [vmem:[%s1011_s3 + $0x60] sm:$0xff] }
  0x35   :  { %332 = vmatpush.msrb.mxu0 %v277_v34  ;;  %361 = vmatpush.msrb.mxu1 %v309_v35  ;;  %v306_v43 = vld [vmem:[%s1011_s3 + $0x168] sm:$0xff]  ;;  %v305_v45 = vld [vmem:[%s1011_s3 + $0x160] sm:$0xff]  ;;  %v272_v46 = vld [vmem:[%s1011_s3 + $0x58] sm:$0xff] }
  0x36   :  { %135 = vmatmul.f32.gmra.mxu0 %v45_v36  ;;  %164 = vmatmul.f32.gmra.mxu1 %v46_v37  ;;  %v304_v47 = vld [vmem:[%s1011_s3 + $0x158] sm:$0xff]  ;;  %v271_v48 = vld [vmem:[%s1011_s3 + $0x50] sm:$0xff]  ;;  %v270_v50 = vld [vmem:[%s1011_s3 + $0x48] sm:$0xff] }
  0x37   :  { %193 = vmatmul.f32.gmra.mxu2 %v45_v36  ;;  %222 = vmatmul.f32.gmra.mxu3 %v46_v37  ;;  %v303_v49 = vld [vmem:[%s1011_s3 + $0x150] sm:$0xff]  ;;  %v302_v51 = vld [vmem:[%s1011_s3 + $0x148] sm:$0xff]  ;;  %v269_v52 = vld [vmem:[%s1011_s3 + $0x40] sm:$0xff] }
  0x38   :  { %391 = vmatpush.msrb.mxu2 %v276_v38  ;;  %420 = vmatpush.msrb.mxu3 %v308_v39  ;;  %v301_v53 = vld [vmem:[%s1011_s3 + $0x140] sm:$0xff]  ;;  %v47_v54 = vld [vmem:[%s1008_s0 + $0x30] sm:$0xff]  ;;  %v48_v55 = vld [vmem:[%s1008_s0 + $0x38] sm:$0xff] }
  0x39   :  { %333 = vmatpush.msrb.mxu0 %v275_v40  ;;  %362 = vmatpush.msrb.mxu1 %v307_v41  ;;  %v268_v56 = vld [vmem:[%s1011_s3 + $0x38] sm:$0xff]  ;;  %v267_v58 = vld [vmem:[%s1011_s3 + $0x30] sm:$0xff]  ;;  %v266_v60 = vld [vmem:[%s1011_s3 + $0x28] sm:$0xff] }
  0x3a   :  { %392 = vmatpush.msrb.mxu2 %v274_v42  ;;  %421 = vmatpush.msrb.mxu3 %v306_v43  ;;  %v300_v57 = vld [vmem:[%s1011_s3 + $0x138] sm:$0xff]  ;;  %v299_v59 = vld [vmem:[%s1011_s3 + $0x130] sm:$0xff]  ;;  %v298_v61 = vld [vmem:[%s1011_s3 + $0x128] sm:$0xff] }
  0x3b   :  { %334 = vmatpush.msrb.mxu0 %v273_v44  ;;  %363 = vmatpush.msrb.mxu1 %v305_v45  ;;  %v265_v62 = vld [vmem:[%s1011_s3 + $0x20] sm:$0xff]  ;;  %v264_v0 = vld [vmem:[%s1011_s3 + $0x18] sm:$0xff]  ;;  %v263_v2 = vld [vmem:[%s1011_s3 + $0x10] sm:$0xff] }
  0x3c   :  { %393 = vmatpush.msrb.mxu2 %v272_v46  ;;  %422 = vmatpush.msrb.mxu3 %v304_v47  ;;  %v297_v63 = vld [vmem:[%s1011_s3 + $0x120] sm:$0xff]  ;;  %v296_v1 = vld [vmem:[%s1011_s3 + $0x118] sm:$0xff]  ;;  %v295_v3 = vld [vmem:[%s1011_s3 + $0x110] sm:$0xff] }
  0x3d   :  { %335 = vmatpush.msrb.mxu0 %v271_v48  ;;  %364 = vmatpush.msrb.mxu1 %v303_v49  ;;  %v262_v4 = vld [vmem:[%s1011_s3 + $0x8] sm:$0xff]  ;;  %v261_v6 = vld [vmem:[%s1011_s3] sm:$0xff]  ;;  %v255_v10 = vld [vmem:[%s1010_s2 + $0x10] sm:$0xff] }
  0x3e   :  { %394 = vmatpush.msrb.mxu2 %v270_v50  ;;  %423 = vmatpush.msrb.mxu3 %v302_v51  ;;  %v294_v5 = vld [vmem:[%s1011_s3 + $0x108] sm:$0xff]  ;;  %v293_v7 = vld [vmem:[%s1011_s3 + $0x100] sm:$0xff]  ;;  %v256_v11 = vld [vmem:[%s1010_s2 + $0x18] sm:$0xff] }
  0x3f   :  { %336 = vmatpush.msrb.mxu0 %v269_v52  ;;  %365 = vmatpush.msrb.mxu1 %v301_v53  ;;  %v253_v8 = vld [vmem:[%s1010_s2] sm:$0xff]  ;;  %v254_v9 = vld [vmem:[%s1010_s2 + $0x8] sm:$0xff]  ;;  %v259_v14 = vld [vmem:[%s1010_s2 + $0x30] sm:$0xff] }
  0x40   :  { %138 = vmatmul.f32.gmra.mxu0 %v47_v54  ;;  %167 = vmatmul.f32.gmra.mxu1 %v48_v55  ;;  %v257_v12 = vld [vmem:[%s1010_s2 + $0x20] sm:$0xff]  ;;  %v258_v13 = vld [vmem:[%s1010_s2 + $0x28] sm:$0xff]  ;;  %v260_v15 = vld [vmem:[%s1010_s2 + $0x38] sm:$0xff] }
  0x41   :  { %196 = vmatmul.f32.gmra.mxu2 %v47_v54  ;;  %225 = vmatmul.f32.gmra.mxu3 %v48_v55  ;;  %v468_v32 = vld [vmem:[%s1012_s4] sm:$0x3]  ;;  %s537_s4 = smov [#allocation3]  }
  0x42   :  { %395 = vmatpush.msrb.mxu2 %v268_v56  ;;  %424 = vmatpush.msrb.mxu3 %v300_v57  ;;  %v470_v37 = vperm.slane %v468_v32, 0  ;;  %v471_v44 = vperm.slane %v468_v32, 1  ;;  %s494_s23 = sshll.u32 %s537_s4, 4  ;;  %s495_s23 = int_to_ptr.vmem [resolvable:$true] %s494_s23 }
  0x43   :  { %337 = vmatpush.msrb.mxu0 %v267_v58  ;;  %366 = vmatpush.msrb.mxu1 %v299_v59 }
  0x44   :  { %396 = vmatpush.msrb.mxu2 %v266_v60  ;;  %425 = vmatpush.msrb.mxu3 %v298_v61 }
  0x45   :  { %338 = vmatpush.msrb.mxu0 %v265_v62  ;;  %367 = vmatpush.msrb.mxu1 %v297_v63 }
  0x46   :  { %397 = vmatpush.msrb.mxu2 %v264_v0  ;;  %426 = vmatpush.msrb.mxu3 %v296_v1 }
  0x47   :  { %339 = vmatpush.msrb.mxu0 %v263_v2  ;;  %368 = vmatpush.msrb.mxu1 %v295_v3 }
  0x48   :  { %398 = vmatpush.msrb.mxu2 %v262_v4  ;;  %427 = vmatpush.msrb.mxu3 %v294_v5 }
  0x49   :  { %340 = vmatpush.msrb.mxu0 %v261_v6  ;;  %369 = vmatpush.msrb.mxu1 %v293_v7 }
  0x4a   :  { %341 = vmatmul.f32.vlgmr.msrb.gmra.mxu0 %v253_v8  ;;  %370 = vmatmul.f32.vlgmr.msrb.gmra.mxu1 %v254_v9 }
  0x4b   :  { %399 = vmatmul.f32.vlgmr.msrb.gmra.mxu2 %v253_v8  ;;  %428 = vmatmul.f32.vlgmr.msrb.gmra.mxu3 %v254_v9 }
  0x52   :  { %344 = vmatmul.f32.gmra.mxu0 %v255_v10  ;;  %373 = vmatmul.f32.gmra.mxu1 %v256_v11 }
  0x53   :  { %402 = vmatmul.f32.gmra.mxu2 %v255_v10  ;;  %431 = vmatmul.f32.gmra.mxu3 %v256_v11 }
  0x5a   :  { %347 = vmatmul.f32.gmra.mxu0 %v257_v12  ;;  %376 = vmatmul.f32.gmra.mxu1 %v258_v13 }
  0x5b   :  { %405 = vmatmul.f32.gmra.mxu2 %v257_v12  ;;  %434 = vmatmul.f32.gmra.mxu3 %v258_v13 }
  0x62   :  { %350 = vmatmul.f32.gmra.mxu0 %v259_v14  ;;  %379 = vmatmul.f32.gmra.mxu1 %v260_v15 }
  0x63   :  { %408 = vmatmul.f32.gmra.mxu2 %v259_v14  ;;  %437 = vmatmul.f32.gmra.mxu3 %v260_v15 }
  0x9f   :  { %v130_v16 = vpop.f32.mrf.mxu0  ;;  %v159_v17 = vpop.f32.mrf.mxu1 }
  0xa0   :  { %v160_v35 = vadd.f32 %v159_v17, %v130_v16 }
  0xa6   :  { %v188_v18 = vpop.f32.mrf.mxu2  ;;  %v217_v19 = vpop.f32.mrf.mxu3 }
  0xa7   :  { %v218_v42 = vadd.f32 %v217_v19, %v188_v18 }
  0xa9   :  { %v133_v20 = vpop.f32.mrf.mxu0  ;;  %v162_v21 = vpop.f32.mrf.mxu1 }
  0xaa   :  { %v163_v47 = vadd.f32 %v162_v21, %v133_v20 }
  0xb0   :  { %v191_v22 = vpop.f32.mrf.mxu2  ;;  %v220_v23 = vpop.f32.mrf.mxu3 }
  0xb1   :  { %v221_v55 = vadd.f32 %v220_v23, %v191_v22 }
  0xb3   :  { %v136_v24 = vpop.f32.mrf.mxu0  ;;  %v165_v25 = vpop.f32.mrf.mxu1 }
  0xb4   :  { %v166_v59 = vadd.f32 %v165_v25, %v136_v24 }
  0xba   :  { %v194_v26 = vpop.f32.mrf.mxu2  ;;  %v223_v27 = vpop.f32.mrf.mxu3 }
  0xbb   :  { %v224_v3 = vadd.f32 %v223_v27, %v194_v26 }
  0xbd   :  { %v139_v28 = vpop.f32.mrf.mxu0  ;;  %v168_v29 = vpop.f32.mrf.mxu1 }
  0xbe   :  { %v169_v7 = vadd.f32 %v168_v29, %v139_v28 }
  0xc4   :  { %v197_v30 = vpop.f32.mrf.mxu2  ;;  %v226_v31 = vpop.f32.mrf.mxu3 }
  0xc5   :  { %v227_v15 = vadd.f32 %v226_v31, %v197_v30 }
  0xc7   :  { %v342_v33 = vpop.f32.mrf.mxu0  ;;  %v371_v34 = vpop.f32.mrf.mxu1 }
  0xc8   :  { %v372_v36 = vadd.f32 %v371_v34, %v342_v33 }
  0xca   :  { %v441_v38 = vadd.f32 %v372_v36, %v160_v35 }
  0xcc   :  { %v474_v39 = vadd.f32 %v470_v37, %v441_v38 }
  0xce   :  { %482 = vst [vmem:[#allocation3] sm:$0xff] %v474_v39  ;;  %v400_v40 = vpop.f32.mrf.mxu2  ;;  %v429_v41 = vpop.f32.mrf.mxu3 }
  0xcf   :  { %v430_v43 = vadd.f32 %v429_v41, %v400_v40  ;;  %v345_v45 = vpop.f32.mrf.mxu0  ;;  %v374_v46 = vpop.f32.mrf.mxu1 }
  0xd0   :  { %v375_v48 = vadd.f32 %v374_v46, %v345_v45 }
  0xd1   :  { %v442_v49 = vadd.f32 %v430_v43, %v218_v42 }
  0xd2   :  { %v443_v50 = vadd.f32 %v375_v48, %v163_v47 }
  0xd3   :  { %v475_v51 = vadd.f32 %v471_v44, %v442_v49 }
  0xd4   :  { %v476_v52 = vadd.f32 %v470_v37, %v443_v50 }
  0xd5   :  { %483 = vst [vmem:[#allocation3 + $0x8] sm:$0xff] %v475_v51 }
  0xd6   :  { %484 = vst [vmem:[#allocation3 + $0x10] sm:$0xff] %v476_v52  ;;  %v403_v53 = vpop.f32.mrf.mxu2  ;;  %v432_v54 = vpop.f32.mrf.mxu3 }
  0xd7   :  { %v433_v56 = vadd.f32 %v432_v54, %v403_v53  ;;  %v348_v57 = vpop.f32.mrf.mxu0  ;;  %v377_v58 = vpop.f32.mrf.mxu1 }
  0xd8   :  { %v378_v60 = vadd.f32 %v377_v58, %v348_v57 }
  0xd9   :  { %v444_v61 = vadd.f32 %v433_v56, %v221_v55 }
  0xda   :  { %v445_v62 = vadd.f32 %v378_v60, %v166_v59 }
  0xdb   :  { %v477_v63 = vadd.f32 %v471_v44, %v444_v61 }
  0xdc   :  { %v478_v0 = vadd.f32 %v470_v37, %v445_v62 }
  0xdd   :  { %485 = vst [vmem:[#allocation3 + $0x18] sm:$0xff] %v477_v63 }
  0xde   :  { %486 = vst [vmem:[#allocation3 + $0x20] sm:$0xff] %v478_v0  ;;  %v406_v1 = vpop.f32.mrf.mxu2  ;;  %v435_v2 = vpop.f32.mrf.mxu3 }
  0xdf   :  { %v436_v4 = vadd.f32 %v435_v2, %v406_v1  ;;  %v351_v5 = vpop.f32.mrf.mxu0  ;;  %v380_v6 = vpop.f32.mrf.mxu1 }
  0xe0   :  { %v381_v8 = vadd.f32 %v380_v6, %v351_v5 }
  0xe1   :  { %v446_v9 = vadd.f32 %v436_v4, %v224_v3 }
  0xe2   :  { %v447_v10 = vadd.f32 %v381_v8, %v169_v7 }
  0xe3   :  { %v479_v11 = vadd.f32 %v471_v44, %v446_v9 }
  0xe4   :  { %v480_v12 = vadd.f32 %v470_v37, %v447_v10 }
  0xe5   :  { %487 = vst [vmem:[#allocation3 + $0x28] sm:$0xff] %v479_v11 }
  0xe6   :  { %488 = vst [vmem:[#allocation3 + $0x30] sm:$0xff] %v480_v12  ;;  %v409_v13 = vpop.f32.mrf.mxu2  ;;  %v438_v14 = vpop.f32.mrf.mxu3 }
  0xe7   :  { %v439_v16 = vadd.f32 %v438_v14, %v409_v13 }
  0xe9   :  { %v448_v17 = vadd.f32 %v439_v16, %v227_v15 }
  0xeb   :  { %v481_v18 = vadd.f32 %v471_v44, %v448_v17 }
  0xed   :  { %489 = vst [vmem:[#allocation3 + $0x38] sm:$0xff] %v481_v18 }
  0xee   :  { %502 = dma.vmem_to_hbm [thread:$0]  %s495_s23, 1024, %s497_s26, [#allocation4], %s538_s27, %s538_s27, %s539_s1  }
  0xef   :  { %535 = dma.done.wait [#allocation4], 1024  }
  0xf0   :  { %536 = vsyncadd [#allocation4], 4294966272 }
  0xf1   :  { %507 = vsyncpa [#allocation4], 1 }

</bundles_post_ra>
